<compile_context>
chip_gen: v7x
topology: tpu7x:2x2x1
jax: 0.10.0
libtpu: 0.0.40
codegen_flags: <defaults>
</compile_context>

<pallas_src>
import functools

import jax
import jax.numpy as jnp
from jax.experimental import pallas as pl
from jax.experimental.pallas import tpu as pltpu


_TM_MAX = 256                      # max rows per grid step (VMEM-friendly on all chips)
_VMEM_LIMIT = 32 * 1024 * 1024     # explicit scoped-VMEM budget


def _round_up(x, m):
    return ((x + m - 1) // m) * m


# ----------------------------------------------------------------------------
# Pallas kernels
# ----------------------------------------------------------------------------
def _matmul_bias_act_kernel(a_ref, w_ref, b_ref, o_ref, *, act):
    """o = act(a @ w + b).  a/w are bf16 (MXU-native); accumulate + epilogue f32."""
    acc = jnp.dot(a_ref[...], w_ref[...], preferred_element_type=jnp.float32)
    acc = acc + b_ref[...]                      # (1, N) broadcast over rows
    if act == "relu":
        acc = jnp.maximum(acc, 0.0)
    elif act == "tanh":
        acc = jnp.tanh(acc)
    o_ref[...] = acc.astype(o_ref.dtype)


def _bottleneck_kernel(a_ref, w1_ref, b1_ref, w2_ref, b2_ref, o_ref):
    """Fused enc3 (linear, no act) + dec1 (linear + ReLU) on the 1x1 bottleneck."""
    h = jnp.dot(a_ref[...], w1_ref[...], preferred_element_type=jnp.float32)
    h = h + b1_ref[...]                          # encoder ends without activation
    o = jnp.dot(h.astype(w2_ref.dtype), w2_ref[...],
                preferred_element_type=jnp.float32)
    o = jnp.maximum(o + b2_ref[...], 0.0)        # decoder's first ReLU
    o_ref[...] = o.astype(o_ref.dtype)


# ----------------------------------------------------------------------------
# Pallas wrappers
# ----------------------------------------------------------------------------
def matmul_bias_act(a, w_bf16, b_f32_row, act):
    """act(a @ w + b) via an M-tiled Pallas kernel.

    a: (M, K) float; w_bf16: (K, N) bfloat16 (pre-laid-out at init);
    b_f32_row: (1, N) float32.  Returns (M, N) float32.
    """
    M, K = a.shape
    K2, N = w_bf16.shape
    assert K == K2, (K, K2)

    if M <= _TM_MAX:
        tm = _round_up(M, 16)
        Mp = tm
    else:
        tm = _TM_MAX
        Mp = _round_up(M, tm)

    a_bf = a.astype(jnp.bfloat16)
    if Mp != M:
        a_bf = jnp.pad(a_bf, ((0, Mp - M), (0, 0)))

    out = pl.pallas_call(
        functools.partial(_matmul_bias_act_kernel, act=act),
        out_shape=jax.ShapeDtypeStruct((Mp, N), jnp.float32),
        grid=(Mp // tm,),
        in_specs=[
            pl.BlockSpec((tm, K), lambda i: (i, 0)),
            pl.BlockSpec((K, N), lambda i: (0, 0)),
            pl.BlockSpec((1, N), lambda i: (0, 0)),
        ],
        out_specs=pl.BlockSpec((tm, N), lambda i: (i, 0)),
        compiler_params=pltpu.CompilerParams(
            dimension_semantics=("parallel",),
            vmem_limit_bytes=_VMEM_LIMIT,
        ),
    )(a_bf, w_bf16, b_f32_row)

    return out if Mp == M else out[:M]


def bottleneck(x_nhwc, p_enc3, p_dec1):
    """x: (N, 7, 7, 32) --enc3 (full-frame 7x7 conv -> 1x1)--> (N, 64)
                        --dec1 (ConvTranspose 7x7 on 1x1 input)--> (N, 7, 7, 32).
    Both steps are exact matmuls; fused into one Pallas kernel."""
    n, h, w, c = x_nhwc.shape
    a = x_nhwc.reshape(n, h * w * c)             # full-frame im2col == reshape
    K1 = a.shape[1]
    Mp = _round_up(n, 16)
    a_bf = a.astype(jnp.bfloat16)
    if Mp != n:
        a_bf = jnp.pad(a_bf, ((0, Mp - n), (0, 0)))

    w1, b1 = p_enc3["w"], p_enc3["b"]            # (K1, 64), (1, 64)
    w2, b2 = p_dec1["w"], p_dec1["b"]            # (64, 49*32), (1, 49*32)
    N2 = w2.shape[1]

    out = pl.pallas_call(
        _bottleneck_kernel,
        out_shape=jax.ShapeDtypeStruct((Mp, N2), jnp.float32),
        grid=(1,),
        in_specs=[
            pl.BlockSpec((Mp, K1), lambda i: (0, 0)),
            pl.BlockSpec(w1.shape, lambda i: (0, 0)),
            pl.BlockSpec(b1.shape, lambda i: (0, 0)),
            pl.BlockSpec(w2.shape, lambda i: (0, 0)),
            pl.BlockSpec(b2.shape, lambda i: (0, 0)),
        ],
        out_specs=pl.BlockSpec((Mp, N2), lambda i: (0, 0)),
        compiler_params=pltpu.CompilerParams(
            dimension_semantics=("arbitrary",),
            vmem_limit_bytes=_VMEM_LIMIT,
        ),
    )(a_bf, w1, b1, w2, b2)

    out = out if Mp == n else out[:n]
    kh = kw = 7
    oc = N2 // (kh * kw)
    return out.reshape(n, kh, kw, oc)            # column layout is (ky, kx, oc)


# ----------------------------------------------------------------------------
# JAX glue: im2col conv and sub-pixel ConvTranspose
# ----------------------------------------------------------------------------
def _im2col(x, kh, kw, stride):
    """x: (N, H, W, C) -> patches (N*OH*OW, kh*kw*C) with K-axis order (kh, kw, C)."""
    n, h, w, c = x.shape
    oh = (h - kh) // stride + 1
    ow = (w - kw) // stride + 1
    cols = []
    for i in range(kh):
        for j in range(kw):
            cols.append(x[:, i:i + stride * oh:stride, j:j + stride * ow:stride, :])
    patches = jnp.stack(cols, axis=3)            # (N, oh, ow, kh*kw, C)
    return patches.reshape(n * oh * ow, kh * kw * c), (n, oh, ow)


def conv2d(x_nhwc, layer, *, kh, kw, stride, pad, act):
    """Conv2d via im2col + fused Pallas matmul.  kh/kw/stride/pad are STATIC ints.
    TODO(synk): fuse the 3x3 im2col gather into the kernel to avoid the 9x patch matrix."""
    if pad:
        x_nhwc = jnp.pad(x_nhwc, ((0, 0), (pad, pad), (pad, pad), (0, 0)))
    patches, (n, oh, ow) = _im2col(x_nhwc, kh, kw, stride)
    out = matmul_bias_act(patches, layer["w"], layer["b"], act)
    oc = layer["b"].shape[1]
    return out.reshape(n, oh, ow, oc)


def _shift_nhwc(x, sr, sc):
    """result[r, c] = x[r+sr, c+sc], zero-filled where out of range."""
    if sr:
        x = jnp.concatenate([x[:, 1:], jnp.zeros_like(x[:, :1])], axis=1)
    if sc:
        x = jnp.concatenate([x[:, :, 1:], jnp.zeros_like(x[:, :, :1])], axis=2)
    return x


def conv_transpose3x3_s2(x_nhwc, layer, *, act):
    """ConvTranspose2d(k=3, stride=2, padding=1, output_padding=1) as ONE matmul
    (K = 4*IC, N = 4*OC) using the sub-pixel decomposition + output interleave."""
    n, h, w, c = x_nhwc.shape
    patches = jnp.concatenate(
        [_shift_nhwc(x_nhwc, sr, sc) for sr, sc in ((0, 0), (0, 1), (1, 0), (1, 1))],
        axis=-1,
    ).reshape(n * h * w, 4 * c)
    out = matmul_bias_act(patches, layer["w"], layer["b"], act)   # (n*h*w, 4*OC)
    oc = layer["b"].shape[1] // 4                # static (shape-derived) int
    out = out.reshape(n, h, w, 2, 2, oc)         # (..., dr, dc, oc)
    out = out.transpose(0, 1, 3, 2, 4, 5)        # (n, h, dr, w, dc, oc)
    return out.reshape(n, 2 * h, 2 * w, oc)


def _subpixel_convT3x3_s2_weights(w, b):
    """ConvTranspose2d weight (IC, OC, 3, 3) with stride=2, padding=1 ->
    (4*IC, 4*OC) block matrix.  Row blocks: input shift (sr, sc); column blocks:
    output-pixel parity (dr, dc).  The kernel tap used is w[:, :, dr+1-2*sr, dc+1-2*sc]
    (zero block if the tap index falls outside [0, 3))."""
    ic, oc, kh, kw = w.shape
    assert kh == 3 and kw == 3
    offsets = ((0, 0), (0, 1), (1, 0), (1, 1))
    blocks = []
    for sr, sc in offsets:                       # row blocks (input shifts)
        row = []
        for dr, dc in offsets:                   # column blocks (output parities)
            ky = dr + 1 - 2 * sr
            kx = dc + 1 - 2 * sc
            if 0 <= ky < kh and 0 <= kx < kw:
                row.append(w[:, :, ky, kx])
            else:
                row.append(jnp.zeros((ic, oc), w.dtype))
        blocks.append(jnp.concatenate(row, axis=1))
    w_mat = jnp.concatenate(blocks, axis=0)      # (4*IC, 4*OC)
    b_mat = jnp.tile(b, 4).reshape(1, 4 * oc)
    return w_mat, b_mat


# ----------------------------------------------------------------------------
# Parameters: PyTorch-style init + one-time Pallas-friendly layout pass.
# The params pytree holds ONLY arrays (no Python ints) so it is jit-safe.
# ----------------------------------------------------------------------------
def _uniform(key, shape, bound):
    return jax.random.uniform(key, shape, jnp.float32, -bound, bound)


def init_params(key):
    keys = jax.random.split(key, 12)
    p = {}

    def conv_layer(wkey, bkey, oc, ic, k):
        bound = 1.0 / float(k * k * ic) ** 0.5                 # Conv2d fan_in = ic*k*k
        w = _uniform(wkey, (oc, ic, k, k), bound)              # PyTorch OIHW
        b = _uniform(bkey, (oc,), bound)
        w2 = jnp.transpose(w, (2, 3, 1, 0)).reshape(k * k * ic, oc)
        return dict(w=w2.astype(jnp.bfloat16),
                    b=b.reshape(1, -1).astype(jnp.float32))

    p["enc1"] = conv_layer(keys[0], keys[1], 16, 3, 3)
    p["enc2"] = conv_layer(keys[2], keys[3], 32, 16, 3)
    p["enc3"] = conv_layer(keys[4], keys[5], 64, 32, 7)

    # dec1: ConvTranspose2d(64, 32, 7) on a 1x1 input == one matmul
    #       out[ky, kx, oc] = sum_ic x[ic] * w[ic, oc, ky, kx] + b[oc]
    ic, oc, k = 64, 32, 7
    bound = 1.0 / float(k * k * oc) ** 0.5                     # ConvT fan_in = weight.size(1)*k*k
    w = _uniform(keys[6], (ic, oc, k, k), bound)
    b = _uniform(keys[7], (oc,), bound)
    p["dec1"] = dict(
        w=jnp.transpose(w, (0, 2, 3, 1)).reshape(ic, k * k * oc).astype(jnp.bfloat16),
        b=jnp.tile(b, k * k).reshape(1, -1).astype(jnp.float32))

    # dec2 / dec3: ConvTranspose2d(k=3, s=2, p=1, op=1) -> sub-pixel block matmul
    for name, wkey, bkey, ic, oc in (("dec2", keys[8], keys[9], 32, 16),
                                     ("dec3", keys[10], keys[11], 16, 3)):
        bound = 1.0 / float(3 * 3 * oc) ** 0.5
        w = _uniform(wkey, (ic, oc, 3, 3), bound)
        b = _uniform(bkey, (oc,), bound)
        w_mat, b_mat = _subpixel_convT3x3_s2_weights(w, b)
        p[name] = dict(w=w_mat.astype(jnp.bfloat16),
                       b=b_mat.astype(jnp.float32))
    return p


# ----------------------------------------------------------------------------
# Forward pass (matches nn.Module.forward semantics; input/output NCHW).
# All layer geometry (kernel size / stride / padding) is STATIC here.
# ----------------------------------------------------------------------------
def autoencoder_forward(params, x_nchw):
    x = jnp.transpose(x_nchw, (0, 2, 3, 1))      # NCHW -> NHWC

    # encoder
    x = conv2d(x, params["enc1"], kh=3, kw=3, stride=2, pad=1, act="relu")  # (N,14,14,16)
    x = conv2d(x, params["enc2"], kh=3, kw=3, stride=2, pad=1, act="relu")  # (N, 7, 7,32)

    # enc3 (no activation) + dec1 (+ReLU) fused on the 1x1 bottleneck
    x = bottleneck(x, params["enc3"], params["dec1"])                       # (N, 7, 7,32)

    # decoder upsampling
    x = conv_transpose3x3_s2(x, params["dec2"], act="relu")                 # (N,14,14,16)
    x = conv_transpose3x3_s2(x, params["dec3"], act="tanh")                 # (N,28,28, 3)

    return jnp.transpose(x, (0, 3, 1, 2))        # NHWC -> NCHW


if __name__ == "__main__":
    key = jax.random.PRNGKey(0)
    k_params, k_x = jax.random.split(key)
    params = init_params(k_params)

    # 28x28 input so the 7x7 bottleneck conv reduces spatial to 1x1 (as designed).
    x = jax.random.normal(k_x, (2, 3, 28, 28), dtype=jnp.float32)

    fwd = jax.jit(autoencoder_forward)
    out = jax.block_until_ready(fwd(params, x))

    assert out.shape == (2, 3, 28, 28), out.shape
    assert out.dtype == jnp.float32
    assert bool(jnp.all(jnp.isfinite(out)))
    print("KERNEL_OK")
</pallas_src>

<mosaic_0001>
module attributes {stable_mosaic.version = 11 : i64} {
  func.func @_matmul_bias_act_kernel(%arg0: i32, %arg1: memref<256x27xbf16, #tpu.memory_space<vmem>>, %arg2: memref<27x16xbf16, #tpu.memory_space<vmem>>, %arg3: memref<1x16xf32, #tpu.memory_space<vmem>>, %arg4: memref<256x16xf32, #tpu.memory_space<vmem>>) attributes {dimension_semantics = [#tpu.dimension_semantics<parallel>], iteration_bounds = array<i64: 2>, scalar_prefetch = 0 : i64, scratch_operands = 0 : i64, tpu.core_type = #tpu.core_type<tc>, window_params = [{transform_indices = @transform_0, window_bounds = array<i64: 256, 27>}, {pipeline_mode = #tpu.pipeline_mode<synchronous>, transform_indices = @transform_1, window_bounds = array<i64: 27, 16>}, {pipeline_mode = #tpu.pipeline_mode<synchronous>, transform_indices = @transform_2, window_bounds = array<i64: 1, 16>}, {transform_indices = @transform_3, window_bounds = array<i64: 256, 16>}]} {
    %c0 = arith.constant 0 : index
    %c0_0 = arith.constant 0 : index
    %0 = vector.load %arg1[%c0, %c0_0] : memref<256x27xbf16, #tpu.memory_space<vmem>>, vector<256x27xbf16>
    %c0_1 = arith.constant 0 : index
    %c0_2 = arith.constant 0 : index
    %1 = vector.load %arg2[%c0_1, %c0_2] : memref<27x16xbf16, #tpu.memory_space<vmem>>, vector<27x16xbf16>
    %cst = arith.constant dense<0.000000e+00> : vector<256x16xf32>
    %2 = tpu.matmul %0, %1, %cst {dimension_numbers = #tpu.dot_dimension_numbers<[1], [0], [0], [1], [0, 0, 1, 1], [], []>} : vector<256x27xbf16>, vector<27x16xbf16>, vector<256x16xf32> -> vector<256x16xf32>
    %c0_3 = arith.constant 0 : index
    %c0_4 = arith.constant 0 : index
    %3 = vector.load %arg3[%c0_3, %c0_4] : memref<1x16xf32, #tpu.memory_space<vmem>>, vector<1x16xf32>
    %4 = vector.broadcast %3 : vector<1x16xf32> to vector<256x16xf32>
    %5 = arith.addf %2, %4 : vector<256x16xf32>
    %cst_5 = arith.constant 0.000000e+00 : f32
    %6 = vector.broadcast %cst_5 : f32 to vector<256x16xf32>
    %7 = arith.maximumf %5, %6 : vector<256x16xf32>
    %c0_6 = arith.constant 0 : index
    %c0_7 = arith.constant 0 : index
    %8 = vector.load %arg4[%c0_6, %c0_7] : memref<256x16xf32, #tpu.memory_space<vmem>>, vector<256x16xf32>
    tpu.vector_store %arg4[%c0_6, %c0_7], %7 {strides = array<i32>} : memref<256x16xf32, #tpu.memory_space<vmem>>, vector<256x16xf32>,
    return
  }
  func.func @transform_0(%arg0: i32) -> (i32, i32) {
    %c0_i32 = arith.constant 0 : i32
    %c0_i32_0 = arith.constant 0 : i32
    return %arg0, %c0_i32 : i32, i32
  }
  func.func @transform_1(%arg0: i32) -> (i32, i32) {
    %c0_i32 = arith.constant 0 : i32
    %c0_i32_0 = arith.constant 0 : i32
    %c0_i32_1 = arith.constant 0 : i32
    return %c0_i32, %c0_i32_0 : i32, i32
  }
  func.func @transform_2(%arg0: i32) -> (i32, i32) {
    %c0_i32 = arith.constant 0 : i32
    %c0_i32_0 = arith.constant 0 : i32
    %c0_i32_1 = arith.constant 0 : i32
    return %c0_i32, %c0_i32_0 : i32, i32
  }
  func.func @transform_3(%arg0: i32) -> (i32, i32) {
    %c0_i32 = arith.constant 0 : i32
    %c0_i32_0 = arith.constant 0 : i32
    return %arg0, %c0_i32 : i32, i32
  }
}

module attributes {stable_mosaic.version = 11 : i64} {
  func.func @_matmul_bias_act_kernel(%arg0: i32, %arg1: memref<112x144xbf16, #tpu.memory_space<vmem>>, %arg2: memref<144x32xbf16, #tpu.memory_space<vmem>>, %arg3: memref<1x32xf32, #tpu.memory_space<vmem>>, %arg4: memref<112x32xf32, #tpu.memory_space<vmem>>) attributes {dimension_semantics = [#tpu.dimension_semantics<parallel>], iteration_bounds = array<i64: 1>, scalar_prefetch = 0 : i64, scratch_operands = 0 : i64, tpu.core_type = #tpu.core_type<tc>, window_params = [{transform_indices = @transform_0, window_bounds = array<i64: 112, 144>}, {pipeline_mode = #tpu.pipeline_mode<synchronous>, transform_indices = @transform_1, window_bounds = array<i64: 144, 32>}, {pipeline_mode = #tpu.pipeline_mode<synchronous>, transform_indices = @transform_2, window_bounds = array<i64: 1, 32>}, {transform_indices = @transform_3, window_bounds = array<i64: 112, 32>}]} {
    %c0 = arith.constant 0 : index
    %c0_0 = arith.constant 0 : index
    %0 = vector.load %arg1[%c0, %c0_0] : memref<112x144xbf16, #tpu.memory_space<vmem>>, vector<112x144xbf16>
    %c0_1 = arith.constant 0 : index
    %c0_2 = arith.constant 0 : index
    %1 = vector.load %arg2[%c0_1, %c0_2] : memref<144x32xbf16, #tpu.memory_space<vmem>>, vector<144x32xbf16>
    %cst = arith.constant dense<0.000000e+00> : vector<112x32xf32>
    %2 = tpu.matmul %0, %1, %cst {dimension_numbers = #tpu.dot_dimension_numbers<[1], [0], [0], [1], [0, 0, 1, 1], [], []>} : vector<112x144xbf16>, vector<144x32xbf16>, vector<112x32xf32> -> vector<112x32xf32>
    %c0_3 = arith.constant 0 : index
    %c0_4 = arith.constant 0 : index
    %3 = vector.load %arg3[%c0_3, %c0_4] : memref<1x32xf32, #tpu.memory_space<vmem>>, vector<1x32xf32>
    %4 = vector.broadcast %3 : vector<1x32xf32> to vector<112x32xf32>
    %5 = arith.addf %2, %4 : vector<112x32xf32>
    %cst_5 = arith.constant 0.000000e+00 : f32
    %6 = vector.broadcast %cst_5 : f32 to vector<112x32xf32>
    %7 = arith.maximumf %5, %6 : vector<112x32xf32>
    %c0_6 = arith.constant 0 : index
    %c0_7 = arith.constant 0 : index
    %8 = vector.load %arg4[%c0_6, %c0_7] : memref<112x32xf32, #tpu.memory_space<vmem>>, vector<112x32xf32>
    tpu.vector_store %arg4[%c0_6, %c0_7], %7 {strides = array<i32>} : memref<112x32xf32, #tpu.memory_space<vmem>>, vector<112x32xf32>,
    return
  }
  func.func @transform_0(%arg0: i32) -> (i32, i32) {
    %c0_i32 = arith.constant 0 : i32
    %c0_i32_0 = arith.constant 0 : i32
    return %arg0, %c0_i32 : i32, i32
  }
  func.func @transform_1(%arg0: i32) -> (i32, i32) {
    %c0_i32 = arith.constant 0 : i32
    %c0_i32_0 = arith.constant 0 : i32
    %c0_i32_1 = arith.constant 0 : i32
    return %c0_i32, %c0_i32_0 : i32, i32
  }
  func.func @transform_2(%arg0: i32) -> (i32, i32) {
    %c0_i32 = arith.constant 0 : i32
    %c0_i32_0 = arith.constant 0 : i32
    %c0_i32_1 = arith.constant 0 : i32
    return %c0_i32, %c0_i32_0 : i32, i32
  }
  func.func @transform_3(%arg0: i32) -> (i32, i32) {
    %c0_i32 = arith.constant 0 : i32
    %c0_i32_0 = arith.constant 0 : i32
    return %arg0, %c0_i32 : i32, i32
  }
}

module attributes {stable_mosaic.version = 11 : i64} {
  func.func @_bottleneck_kernel(%arg0: i32, %arg1: memref<16x1568xbf16, #tpu.memory_space<vmem>>, %arg2: memref<1568x64xbf16, #tpu.memory_space<vmem>>, %arg3: memref<1x64xf32, #tpu.memory_space<vmem>>, %arg4: memref<64x1568xbf16, #tpu.memory_space<vmem>>, %arg5: memref<1x1568xf32, #tpu.memory_space<vmem>>, %arg6: memref<16x1568xf32, #tpu.memory_space<vmem>>) attributes {dimension_semantics = [#tpu.dimension_semantics<arbitrary>], iteration_bounds = array<i64: 1>, scalar_prefetch = 0 : i64, scratch_operands = 0 : i64, tpu.core_type = #tpu.core_type<tc>, window_params = [{pipeline_mode = #tpu.pipeline_mode<synchronous>, transform_indices = @transform_0, window_bounds = array<i64: 16, 1568>}, {pipeline_mode = #tpu.pipeline_mode<synchronous>, transform_indices = @transform_1, window_bounds = array<i64: 1568, 64>}, {pipeline_mode = #tpu.pipeline_mode<synchronous>, transform_indices = @transform_2, window_bounds = array<i64: 1, 64>}, {pipeline_mode = #tpu.pipeline_mode<synchronous>, transform_indices = @transform_3, window_bounds = array<i64: 64, 1568>}, {pipeline_mode = #tpu.pipeline_mode<synchronous>, transform_indices = @transform_4, window_bounds = array<i64: 1, 1568>}, {pipeline_mode = #tpu.pipeline_mode<synchronous>, transform_indices = @transform_5, window_bounds = array<i64: 16, 1568>}]} {
    %c0 = arith.constant 0 : index
    %c0_0 = arith.constant 0 : index
    %0 = vector.load %arg1[%c0, %c0_0] : memref<16x1568xbf16, #tpu.memory_space<vmem>>, vector<16x1568xbf16>
    %c0_1 = arith.constant 0 : index
    %c0_2 = arith.constant 0 : index
    %1 = vector.load %arg2[%c0_1, %c0_2] : memref<1568x64xbf16, #tpu.memory_space<vmem>>, vector<1568x64xbf16>
    %cst = arith.constant dense<0.000000e+00> : vector<16x64xf32>
    %2 = tpu.matmul %0, %1, %cst {dimension_numbers = #tpu.dot_dimension_numbers<[1], [0], [0], [1], [0, 0, 1, 1], [], []>} : vector<16x1568xbf16>, vector<1568x64xbf16>, vector<16x64xf32> -> vector<16x64xf32>
    %c0_3 = arith.constant 0 : index
    %c0_4 = arith.constant 0 : index
    %3 = vector.load %arg3[%c0_3, %c0_4] : memref<1x64xf32, #tpu.memory_space<vmem>>, vector<1x64xf32>
    %4 = vector.broadcast %3 : vector<1x64xf32> to vector<16x64xf32>
    %5 = arith.addf %2, %4 : vector<16x64xf32>
    %6 = arith.truncf %5 : vector<16x64xf32> to vector<16x64xbf16>
    %c0_5 = arith.constant 0 : index
    %c0_6 = arith.constant 0 : index
    %7 = vector.load %arg4[%c0_5, %c0_6] : memref<64x1568xbf16, #tpu.memory_space<vmem>>, vector<64x1568xbf16>
    %cst_7 = arith.constant dense<0.000000e+00> : vector<16x1568xf32>
    %8 = tpu.matmul %6, %7, %cst_7 {dimension_numbers = #tpu.dot_dimension_numbers<[1], [0], [0], [1], [0, 0, 1, 1], [], []>} : vector<16x64xbf16>, vector<64x1568xbf16>, vector<16x1568xf32> -> vector<16x1568xf32>
    %c0_8 = arith.constant 0 : index
    %c0_9 = arith.constant 0 : index
    %9 = vector.load %arg5[%c0_8, %c0_9] : memref<1x1568xf32, #tpu.memory_space<vmem>>, vector<1x1568xf32>
    %10 = vector.broadcast %9 : vector<1x1568xf32> to vector<16x1568xf32>
    %11 = arith.addf %8, %10 : vector<16x1568xf32>
    %cst_10 = arith.constant 0.000000e+00 : f32
    %12 = vector.broadcast %cst_10 : f32 to vector<16x1568xf32>
    %13 = arith.maximumf %11, %12 : vector<16x1568xf32>
    %c0_11 = arith.constant 0 : index
    %c0_12 = arith.constant 0 : index
    %14 = vector.load %arg6[%c0_11, %c0_12] : memref<16x1568xf32, #tpu.memory_space<vmem>>, vector<16x1568xf32>
    tpu.vector_store %arg6[%c0_11, %c0_12], %13 {strides = array<i32>} : memref<16x1568xf32, #tpu.memory_space<vmem>>, vector<16x1568xf32>,
    return
  }
  func.func @transform_0(%arg0: i32) -> (i32, i32) {
    %c0_i32 = arith.constant 0 : i32
    %c0_i32_0 = arith.constant 0 : i32
    %c0_i32_1 = arith.constant 0 : i32
    return %c0_i32, %c0_i32_0 : i32, i32
  }
  func.func @transform_1(%arg0: i32) -> (i32, i32) {
    %c0_i32 = arith.constant 0 : i32
    %c0_i32_0 = arith.constant 0 : i32
    %c0_i32_1 = arith.constant 0 : i32
    return %c0_i32, %c0_i32_0 : i32, i32
  }
  func.func @transform_2(%arg0: i32) -> (i32, i32) {
    %c0_i32 = arith.constant 0 : i32
    %c0_i32_0 = arith.constant 0 : i32
    %c0_i32_1 = arith.constant 0 : i32
    return %c0_i32, %c0_i32_0 : i32, i32
  }
  func.func @transform_3(%arg0: i32) -> (i32, i32) {
    %c0_i32 = arith.constant 0 : i32
    %c0_i32_0 = arith.constant 0 : i32
    %c0_i32_1 = arith.constant 0 : i32
    return %c0_i32, %c0_i32_0 : i32, i32
  }
  func.func @transform_4(%arg0: i32) -> (i32, i32) {
    %c0_i32 = arith.constant 0 : i32
    %c0_i32_0 = arith.constant 0 : i32
    %c0_i32_1 = arith.constant 0 : i32
    return %c0_i32, %c0_i32_0 : i32, i32
  }
  func.func @transform_5(%arg0: i32) -> (i32, i32) {
    %c0_i32 = arith.constant 0 : i32
    %c0_i32_0 = arith.constant 0 : i32
    %c0_i32_1 = arith.constant 0 : i32
    return %c0_i32, %c0_i32_0 : i32, i32
  }
}

module attributes {stable_mosaic.version = 11 : i64} {
  func.func @_matmul_bias_act_kernel(%arg0: i32, %arg1: memref<112x128xbf16, #tpu.memory_space<vmem>>, %arg2: memref<128x64xbf16, #tpu.memory_space<vmem>>, %arg3: memref<1x64xf32, #tpu.memory_space<vmem>>, %arg4: memref<112x64xf32, #tpu.memory_space<vmem>>) attributes {dimension_semantics = [#tpu.dimension_semantics<parallel>], iteration_bounds = array<i64: 1>, scalar_prefetch = 0 : i64, scratch_operands = 0 : i64, tpu.core_type = #tpu.core_type<tc>, window_params = [{transform_indices = @transform_0, window_bounds = array<i64: 112, 128>}, {pipeline_mode = #tpu.pipeline_mode<synchronous>, transform_indices = @transform_1, window_bounds = array<i64: 128, 64>}, {pipeline_mode = #tpu.pipeline_mode<synchronous>, transform_indices = @transform_2, window_bounds = array<i64: 1, 64>}, {transform_indices = @transform_3, window_bounds = array<i64: 112, 64>}]} {
    %c0 = arith.constant 0 : index
    %c0_0 = arith.constant 0 : index
    %0 = vector.load %arg1[%c0, %c0_0] : memref<112x128xbf16, #tpu.memory_space<vmem>>, vector<112x128xbf16>
    %c0_1 = arith.constant 0 : index
    %c0_2 = arith.constant 0 : index
    %1 = vector.load %arg2[%c0_1, %c0_2] : memref<128x64xbf16, #tpu.memory_space<vmem>>, vector<128x64xbf16>
    %cst = arith.constant dense<0.000000e+00> : vector<112x64xf32>
    %2 = tpu.matmul %0, %1, %cst {dimension_numbers = #tpu.dot_dimension_numbers<[1], [0], [0], [1], [0, 0, 1, 1], [], []>} : vector<112x128xbf16>, vector<128x64xbf16>, vector<112x64xf32> -> vector<112x64xf32>
    %c0_3 = arith.constant 0 : index
    %c0_4 = arith.constant 0 : index
    %3 = vector.load %arg3[%c0_3, %c0_4] : memref<1x64xf32, #tpu.memory_space<vmem>>, vector<1x64xf32>
    %4 = vector.broadcast %3 : vector<1x64xf32> to vector<112x64xf32>
    %5 = arith.addf %2, %4 : vector<112x64xf32>
    %cst_5 = arith.constant 0.000000e+00 : f32
    %6 = vector.broadcast %cst_5 : f32 to vector<112x64xf32>
    %7 = arith.maximumf %5, %6 : vector<112x64xf32>
    %c0_6 = arith.constant 0 : index
    %c0_7 = arith.constant 0 : index
    %8 = vector.load %arg4[%c0_6, %c0_7] : memref<112x64xf32, #tpu.memory_space<vmem>>, vector<112x64xf32>
    tpu.vector_store %arg4[%c0_6, %c0_7], %7 {strides = array<i32>} : memref<112x64xf32, #tpu.memory_space<vmem>>, vector<112x64xf32>,
    return
  }
  func.func @transform_0(%arg0: i32) -> (i32, i32) {
    %c0_i32 = arith.constant 0 : i32
    %c0_i32_0 = arith.constant 0 : i32
    return %arg0, %c0_i32 : i32, i32
  }
  func.func @transform_1(%arg0: i32) -> (i32, i32) {
    %c0_i32 = arith.constant 0 : i32
    %c0_i32_0 = arith.constant 0 : i32
    %c0_i32_1 = arith.constant 0 : i32
    return %c0_i32, %c0_i32_0 : i32, i32
  }
  func.func @transform_2(%arg0: i32) -> (i32, i32) {
    %c0_i32 = arith.constant 0 : i32
    %c0_i32_0 = arith.constant 0 : i32
    %c0_i32_1 = arith.constant 0 : i32
    return %c0_i32, %c0_i32_0 : i32, i32
  }
  func.func @transform_3(%arg0: i32) -> (i32, i32) {
    %c0_i32 = arith.constant 0 : i32
    %c0_i32_0 = arith.constant 0 : i32
    return %arg0, %c0_i32 : i32, i32
  }
}

module attributes {stable_mosaic.version = 11 : i64} {
  func.func @_matmul_bias_act_kernel(%arg0: i32, %arg1: memref<256x64xbf16, #tpu.memory_space<vmem>>, %arg2: memref<64x12xbf16, #tpu.memory_space<vmem>>, %arg3: memref<1x12xf32, #tpu.memory_space<vmem>>, %arg4: memref<256x12xf32, #tpu.memory_space<vmem>>) attributes {dimension_semantics = [#tpu.dimension_semantics<parallel>], iteration_bounds = array<i64: 2>, scalar_prefetch = 0 : i64, scratch_operands = 0 : i64, tpu.core_type = #tpu.core_type<tc>, window_params = [{transform_indices = @transform_0, window_bounds = array<i64: 256, 64>}, {pipeline_mode = #tpu.pipeline_mode<synchronous>, transform_indices = @transform_1, window_bounds = array<i64: 64, 12>}, {pipeline_mode = #tpu.pipeline_mode<synchronous>, transform_indices = @transform_2, window_bounds = array<i64: 1, 12>}, {transform_indices = @transform_3, window_bounds = array<i64: 256, 12>}]} {
    %c0 = arith.constant 0 : index
    %c0_0 = arith.constant 0 : index
    %0 = vector.load %arg1[%c0, %c0_0] : memref<256x64xbf16, #tpu.memory_space<vmem>>, vector<256x64xbf16>
    %c0_1 = arith.constant 0 : index
    %c0_2 = arith.constant 0 : index
    %1 = vector.load %arg2[%c0_1, %c0_2] : memref<64x12xbf16, #tpu.memory_space<vmem>>, vector<64x12xbf16>
    %cst = arith.constant dense<0.000000e+00> : vector<256x12xf32>
    %2 = tpu.matmul %0, %1, %cst {dimension_numbers = #tpu.dot_dimension_numbers<[1], [0], [0], [1], [0, 0, 1, 1], [], []>} : vector<256x64xbf16>, vector<64x12xbf16>, vector<256x12xf32> -> vector<256x12xf32>
    %c0_3 = arith.constant 0 : index
    %c0_4 = arith.constant 0 : index
    %3 = vector.load %arg3[%c0_3, %c0_4] : memref<1x12xf32, #tpu.memory_space<vmem>>, vector<1x12xf32>
    %4 = vector.broadcast %3 : vector<1x12xf32> to vector<256x12xf32>
    %5 = arith.addf %2, %4 : vector<256x12xf32>
    %6 = math.tanh %5 : vector<256x12xf32>
    %c0_5 = arith.constant 0 : index
    %c0_6 = arith.constant 0 : index
    %7 = vector.load %arg4[%c0_5, %c0_6] : memref<256x12xf32, #tpu.memory_space<vmem>>, vector<256x12xf32>
    tpu.vector_store %arg4[%c0_5, %c0_6], %6 {strides = array<i32>} : memref<256x12xf32, #tpu.memory_space<vmem>>, vector<256x12xf32>,
    return
  }
  func.func @transform_0(%arg0: i32) -> (i32, i32) {
    %c0_i32 = arith.constant 0 : i32
    %c0_i32_0 = arith.constant 0 : i32
    return %arg0, %c0_i32 : i32, i32
  }
  func.func @transform_1(%arg0: i32) -> (i32, i32) {
    %c0_i32 = arith.constant 0 : i32
    %c0_i32_0 = arith.constant 0 : i32
    %c0_i32_1 = arith.constant 0 : i32
    return %c0_i32, %c0_i32_0 : i32, i32
  }
  func.func @transform_2(%arg0: i32) -> (i32, i32) {
    %c0_i32 = arith.constant 0 : i32
    %c0_i32_0 = arith.constant 0 : i32
    %c0_i32_1 = arith.constant 0 : i32
    return %c0_i32, %c0_i32_0 : i32, i32
  }
  func.func @transform_3(%arg0: i32) -> (i32, i32) {
    %c0_i32 = arith.constant 0 : i32
    %c0_i32_0 = arith.constant 0 : i32
    return %arg0, %c0_i32 : i32, i32
  }
}

</mosaic_0001>

<bundles_post_ra>
// kernel: autoencoder_forward.5
= control target key start
LH: loop header
LB: loop body
LE: loop exit
PB: predicated region body
PF: predicated region fallthrough
CT: control target
= control target key end

     0   :  { %s807_s12 = smov 0   ;;  %s971_s0 = inlined_call_operand.vmem [shape: bf16[512,27], index: 0, kind: input, shape index: {}]   ;;  %s972_s1 = inlined_call_operand.vmem [shape: bf16[27,16], index: 1, kind: input, shape index: {}]   ;;  %s973_s2 = inlined_call_operand.vmem [shape: f32[1,16], index: 2, kind: input, shape index: {}]   ;;  %s974_s3 = inlined_call_operand.vmem [shape: f32[512,16], index: 3, kind: output, shape index: {}]  }
   0x1 LB: > { %s647_s13 = sadd.s32 4294967295, %s784_s12   ;;  %p651_p0 = scmp.ge.s32.totalorder %s784_s12, 1  ;;  %s784_s12 = sphi %s807_s12, %s13_s12  }
   0x2   : > { %p138_p1 = scmp.lt.s32.totalorder %s784_s12, 3 }
   0x4   : > { %p139_p2 = pnand %p651_p0, %p138_p1 }
   0x5   : > { %v760_v0 = vld [vmem:[%s972_s1] sm:$0xff] (!%p139_p2)   ;;  %vm358_vm0 = vcmask (!%p139_p2), 1044480   ;;  %v761_v1 = vld [vmem:[%s972_s1 + $0x8] sm:$0x3f] (!%p139_p2)   ;;  %vm359_vm1 = vcmask (!%p139_p2), 1045504   ;;  %s652_s18 = sshll.u32 (!%p139_p2), %s647_s13, 5 }
   0x6   : > { %142 = sbr.rel (%p139_p2) target bundleno = 263 (0x107), region = 32  ;;  %711 = vmatprep.subr.bf16.mxu0 (!%p139_p2), %v760_v0  ;;  %747 = vmatprep.subr.bf16.mxu1 (!%p139_p2), %v760_v0  ;;  %v786_v2 = vmov (!%p139_p2), 65535   ;;  %p163_p3 = scmp.lt.s32.totalorder (!%p139_p2), %s652_s18, 63  ;;  %vm309_vm2 = vcmask (!%p139_p2), 220160   ;;  %v864_v22 = vld [vmem:[%s973_s2] ss:$0 sm:$0xff] (!%p139_p2) }
   0x7   : > { %712 = vmatpush3.bf16.msra.mxu0 (!%p139_p2), %v760_v0  ;;  %749 = vmatpush3.bf16.msra.mxu1 (!%p139_p2), %v760_v0  ;;  %v360_v3 = vsel (!%p139_p2), %vm358_vm0, 4294967295, %v786_v2  ;;  %vm558_vm3 = vcmask (!%p139_p2), 130048  }
   0x8   : > { %v361_v4 = vsel (!%p139_p2), %vm359_vm1, %v360_v3, 0 }
   0x9   : > { %v363_v5 = vand.u32 (!%p139_p2), %v761_v1, %v361_v4 }
   0xb   : > { %713 = vmatprep.subr.bf16.mxu0 (!%p139_p2), %v363_v5  ;;  %748 = vmatprep.subr.bf16.mxu1 (!%p139_p2), %v363_v5 }
   0xc   : > { %714 = vmatpush3.bf16.msra.mxu0 (!%p139_p2), %v363_v5  ;;  %750 = vmatpush3.bf16.msra.mxu1 (!%p139_p2), %v363_v5 }
   0xd   : > { %s976_s18 = smov (!%p163_p3, %s652_s18), 63 }
   0xe   : > { %s653_s19 = sshll.u32 %s976_s18, 2  ;;  %s655_s25 = sshll.u32 %s976_s18, 3 }
   0xf   : > { %s827_s22 = scalar_lea.vmem %s971_s0, %s653_s19  ;;  %s871_s28 = scalar_lea.vmem %s974_s3, %s655_s25 }
  0x10   : > { %v762_v6 = vld [vmem:[%s827_s22] sm:$0xff]   ;;  %v764_v8 = vld [vmem:[%s827_s22 + $0x8] sm:$0xff]   ;;  %v766_v10 = vld [vmem:[%s827_s22 + $0x10] sm:$0xff]  }
  0x11   : > { %v763_v7 = vld [vmem:[%s827_s22 + $0x40] sm:$0xff]   ;;  %715 = vmatprep.mubr.msk.bf16.mxu0 %vm309_vm2, %v762_v6  ;;  %v765_v9 = vld [vmem:[%s827_s22 + $0x48] sm:$0xff]   ;;  %v767_v11 = vld [vmem:[%s827_s22 + $0x50] sm:$0xff]  }
  0x12   : > { %731 = vmatprep.mubr.msk.bf16.mxu1 %vm309_vm2, %v763_v7  ;;  %716 = vmatmul.mubr.msk.bf16.vlgmr.msra.gmra.mrb[0].mxu0 %vm309_vm2, %v764_v8  ;;  %v768_v12 = vld [vmem:[%s827_s22 + $0x18] sm:$0xff]   ;;  %v770_v14 = vld [vmem:[%s827_s22 + $0x20] sm:$0xff]   ;;  %v772_v16 = vld [vmem:[%s827_s22 + $0x28] sm:$0xff]  }
  0x13   : > { %732 = vmatmul.mubr.msk.bf16.vlgmr.msra.gmra.mrb[0].mxu1 %vm309_vm2, %v765_v9  ;;  %719 = vmatprep.mubr.msk.bf16.mxu0 %vm309_vm2, %v766_v10  ;;  %v769_v13 = vld [vmem:[%s827_s22 + $0x58] sm:$0xff]   ;;  %v771_v15 = vld [vmem:[%s827_s22 + $0x60] sm:$0xff]   ;;  %v773_v17 = vld [vmem:[%s827_s22 + $0x68] sm:$0xff]  }
  0x14   : > { %735 = vmatprep.mubr.msk.bf16.mxu1 %vm309_vm2, %v767_v11  ;;  %v774_v18 = vld [vmem:[%s827_s22 + $0x30] sm:$0xff]   ;;  %v776_v20 = vld [vmem:[%s827_s22 + $0x38] sm:$0xff]  }
  0x15   : > { %v775_v19 = vld [vmem:[%s827_s22 + $0x70] sm:$0xff]   ;;  %v777_v21 = vld [vmem:[%s827_s22 + $0x78] sm:$0xff]  }
  0x1a   : > { %720 = vmatmul.mubr.msk.bf16.gmra.mrb[4].mxu0 %vm309_vm2, %v768_v12 }
  0x1b   : > { %736 = vmatmul.mubr.msk.bf16.gmra.mrb[4].mxu1 %vm309_vm2, %v769_v13  ;;  %723 = vmatprep.mubr.msk.bf16.mxu0 %vm309_vm2, %v770_v14 }
  0x1c   : > { %739 = vmatprep.mubr.msk.bf16.mxu1 %vm309_vm2, %v771_v15 }
  0x22   : > { %724 = vmatmul.mubr.msk.bf16.gmra.mrb[8].mxu0 %vm309_vm2, %v772_v16 }
  0x23   : > { %740 = vmatmul.mubr.msk.bf16.gmra.mrb[8].mxu1 %vm309_vm2, %v773_v17  ;;  %727 = vmatprep.mubr.msk.bf16.mxu0 %vm309_vm2, %v774_v18 }
  0x24   : > { %743 = vmatprep.mubr.msk.bf16.mxu1 %vm309_vm2, %v775_v19 }
  0x2a   : > { %728 = vmatmul.mubr.msk.bf16.gmra.mrb[12].mxu0 %vm309_vm2, %v776_v20 }
  0x2b   : > { %744 = vmatmul.mubr.msk.bf16.gmra.mrb[12].mxu1 %vm309_vm2, %v777_v21 }
  0xe5   : > { %v717_v23 = vpop.f32.mrb[0].mxu0 }
  0xe6   : > { %v408_v24 = vadd.f32 %v717_v23, %v864_v22  ;;  %v733_v25 = vpop.f32.mrb[0].mxu1  ;;  %v399_v26 = vpop.f32.mrb[1].mxu0 }
  0xe7   : > { %v472_v27 = vadd.f32 %v733_v25, %v864_v22  ;;  %v400_v28 = vadd.f32 %v864_v22, %v399_v26  ;;  %v463_v29 = vpop.f32.mrb[1].mxu1  ;;  %v718_v30 = vpop.f32.mrb[2].mxu0 }
  0xe8   : > { %v528_v31 = vmax.f32 %v408_v24, 0.0  ;;  %v464_v32 = vadd.f32 %v864_v22, %v463_v29  ;;  %v411_v33 = vadd.f32 %v718_v30, %v864_v22  ;;  %v734_v34 = vpop.f32.mrb[2].mxu1  ;;  %v402_v35 = vpop.f32.mrb[3].mxu0 }
  0xe9   : > { %v544_v36 = vmax.f32 %v472_v27, 0.0  ;;  %v526_v37 = vmax.f32 %v400_v28, 0.0  ;;  %v475_v38 = vadd.f32 %v734_v34, %v864_v22  ;;  %v403_v39 = vadd.f32 %v864_v22, %v402_v35  ;;  %v466_v40 = vpop.f32.mrb[3].mxu1 }
  0xea   : > { %561 = vst.msk [vmem:[%s871_s28 + $0x10] sm:$0xff] %vm558_vm3, %v528_v31  ;;  %v542_v41 = vmax.f32 %v464_v32, 0.0  ;;  %v529_v42 = vmax.f32 %v411_v33, 0.0  ;;  %v467_v43 = vadd.f32 %v864_v22, %v466_v40 }
  0xeb   : > { %577 = vst.msk [vmem:[%s871_s28 + $0x90] sm:$0xff] %vm558_vm3, %v544_v36  ;;  %559 = vst.msk [vmem:[%s871_s28] sm:$0xff] %vm558_vm3, %v526_v37  ;;  %v545_v44 = vmax.f32 %v475_v38, 0.0  ;;  %v527_v45 = vmax.f32 %v403_v39, 0.0 }
  0xec   : > { %575 = vst.msk [vmem:[%s871_s28 + $0x80] sm:$0xff] %vm558_vm3, %v542_v41  ;;  %562 = vst.msk [vmem:[%s871_s28 + $0x18] sm:$0xff] %vm558_vm3, %v529_v42  ;;  %v543_v46 = vmax.f32 %v467_v43, 0.0 }
  0xed   : > { %578 = vst.msk [vmem:[%s871_s28 + $0x98] sm:$0xff] %vm558_vm3, %v545_v44  ;;  %560 = vst.msk [vmem:[%s871_s28 + $0x8] sm:$0xff] %vm558_vm3, %v527_v45  ;;  %v721_v47 = vpop.f32.mrb[4].mxu0 }
  0xee   : > { %576 = vst.msk [vmem:[%s871_s28 + $0x88] sm:$0xff] %vm558_vm3, %v543_v46  ;;  %v424_v48 = vadd.f32 %v721_v47, %v864_v22  ;;  %v737_v49 = vpop.f32.mrb[4].mxu1  ;;  %v415_v50 = vpop.f32.mrb[5].mxu0 }
  0xef   : > { %v488_v51 = vadd.f32 %v737_v49, %v864_v22  ;;  %v416_v52 = vadd.f32 %v864_v22, %v415_v50  ;;  %v479_v53 = vpop.f32.mrb[5].mxu1  ;;  %v722_v54 = vpop.f32.mrb[6].mxu0 }
  0xf0   : > { %v532_v55 = vmax.f32 %v424_v48, 0.0  ;;  %v480_v56 = vadd.f32 %v864_v22, %v479_v53  ;;  %v427_v57 = vadd.f32 %v722_v54, %v864_v22  ;;  %v738_v58 = vpop.f32.mrb[6].mxu1  ;;  %v418_v59 = vpop.f32.mrb[7].mxu0 }
  0xf1   : > { %v548_v60 = vmax.f32 %v488_v51, 0.0  ;;  %v530_v61 = vmax.f32 %v416_v52, 0.0  ;;  %v491_v62 = vadd.f32 %v738_v58, %v864_v22  ;;  %v419_v63 = vadd.f32 %v864_v22, %v418_v59  ;;  %v482_v0 = vpop.f32.mrb[7].mxu1 }
  0xf2   : > { %565 = vst.msk [vmem:[%s871_s28 + $0x30] sm:$0xff] %vm558_vm3, %v532_v55  ;;  %v546_v1 = vmax.f32 %v480_v56, 0.0  ;;  %v533_v2 = vmax.f32 %v427_v57, 0.0  ;;  %v483_v3 = vadd.f32 %v864_v22, %v482_v0 }
  0xf3   : > { %581 = vst.msk [vmem:[%s871_s28 + $0xb0] sm:$0xff] %vm558_vm3, %v548_v60  ;;  %563 = vst.msk [vmem:[%s871_s28 + $0x20] sm:$0xff] %vm558_vm3, %v530_v61  ;;  %v549_v4 = vmax.f32 %v491_v62, 0.0  ;;  %v531_v5 = vmax.f32 %v419_v63, 0.0 }
  0xf4   : > { %579 = vst.msk [vmem:[%s871_s28 + $0xa0] sm:$0xff] %vm558_vm3, %v546_v1  ;;  %566 = vst.msk [vmem:[%s871_s28 + $0x38] sm:$0xff] %vm558_vm3, %v533_v2  ;;  %v547_v6 = vmax.f32 %v483_v3, 0.0 }
  0xf5   : > { %582 = vst.msk [vmem:[%s871_s28 + $0xb8] sm:$0xff] %vm558_vm3, %v549_v4  ;;  %564 = vst.msk [vmem:[%s871_s28 + $0x28] sm:$0xff] %vm558_vm3, %v531_v5  ;;  %v725_v7 = vpop.f32.mrb[8].mxu0 }
  0xf6   : > { %580 = vst.msk [vmem:[%s871_s28 + $0xa8] sm:$0xff] %vm558_vm3, %v547_v6  ;;  %v440_v8 = vadd.f32 %v725_v7, %v864_v22  ;;  %v741_v9 = vpop.f32.mrb[8].mxu1  ;;  %v431_v10 = vpop.f32.mrb[9].mxu0 }
  0xf7   : > { %v504_v11 = vadd.f32 %v741_v9, %v864_v22  ;;  %v432_v12 = vadd.f32 %v864_v22, %v431_v10  ;;  %v495_v13 = vpop.f32.mrb[9].mxu1  ;;  %v726_v14 = vpop.f32.mrb[10].mxu0 }
  0xf8   : > { %v536_v15 = vmax.f32 %v440_v8, 0.0  ;;  %v496_v16 = vadd.f32 %v864_v22, %v495_v13  ;;  %v443_v17 = vadd.f32 %v726_v14, %v864_v22  ;;  %v742_v18 = vpop.f32.mrb[10].mxu1  ;;  %v434_v19 = vpop.f32.mrb[11].mxu0 }
  0xf9   : > { %v552_v20 = vmax.f32 %v504_v11, 0.0  ;;  %v534_v21 = vmax.f32 %v432_v12, 0.0  ;;  %v507_v23 = vadd.f32 %v742_v18, %v864_v22  ;;  %v435_v24 = vadd.f32 %v864_v22, %v434_v19  ;;  %v498_v25 = vpop.f32.mrb[11].mxu1 }
  0xfa   : > { %569 = vst.msk [vmem:[%s871_s28 + $0x50] sm:$0xff] %vm558_vm3, %v536_v15  ;;  %v550_v26 = vmax.f32 %v496_v16, 0.0  ;;  %v537_v27 = vmax.f32 %v443_v17, 0.0  ;;  %v499_v28 = vadd.f32 %v864_v22, %v498_v25 }
  0xfb   : > { %585 = vst.msk [vmem:[%s871_s28 + $0xd0] sm:$0xff] %vm558_vm3, %v552_v20  ;;  %567 = vst.msk [vmem:[%s871_s28 + $0x40] sm:$0xff] %vm558_vm3, %v534_v21  ;;  %v553_v29 = vmax.f32 %v507_v23, 0.0  ;;  %v535_v30 = vmax.f32 %v435_v24, 0.0 }
  0xfc   : > { %583 = vst.msk [vmem:[%s871_s28 + $0xc0] sm:$0xff] %vm558_vm3, %v550_v26  ;;  %570 = vst.msk [vmem:[%s871_s28 + $0x58] sm:$0xff] %vm558_vm3, %v537_v27  ;;  %v551_v31 = vmax.f32 %v499_v28, 0.0 }
  0xfd   : > { %586 = vst.msk [vmem:[%s871_s28 + $0xd8] sm:$0xff] %vm558_vm3, %v553_v29  ;;  %568 = vst.msk [vmem:[%s871_s28 + $0x48] sm:$0xff] %vm558_vm3, %v535_v30  ;;  %v729_v32 = vpop.f32.mrb[12].mxu0 }
  0xfe   : > { %584 = vst.msk [vmem:[%s871_s28 + $0xc8] sm:$0xff] %vm558_vm3, %v551_v31  ;;  %v456_v33 = vadd.f32 %v729_v32, %v864_v22  ;;  %v745_v34 = vpop.f32.mrb[12].mxu1  ;;  %v447_v35 = vpop.f32.mrb[13].mxu0 }
  0xff   : > { %v520_v36 = vadd.f32 %v745_v34, %v864_v22  ;;  %v448_v37 = vadd.f32 %v864_v22, %v447_v35  ;;  %v511_v38 = vpop.f32.mrb[13].mxu1  ;;  %v730_v39 = vpop.f32.mrb[14].mxu0 }
 0x100   : > { %v540_v40 = vmax.f32 %v456_v33, 0.0  ;;  %v512_v41 = vadd.f32 %v864_v22, %v511_v38  ;;  %v459_v42 = vadd.f32 %v730_v39, %v864_v22  ;;  %v746_v43 = vpop.f32.mrb[14].mxu1  ;;  %v450_v44 = vpop.f32.mrb[15].mxu0 }
 0x101   : > { %v556_v45 = vmax.f32 %v520_v36, 0.0  ;;  %v538_v46 = vmax.f32 %v448_v37, 0.0  ;;  %v523_v47 = vadd.f32 %v746_v43, %v864_v22  ;;  %v451_v48 = vadd.f32 %v864_v22, %v450_v44  ;;  %v514_v49 = vpop.f32.mrb[15].mxu1 }
 0x102   : > { %573 = vst.msk [vmem:[%s871_s28 + $0x70] sm:$0xff] %vm558_vm3, %v540_v40  ;;  %v554_v50 = vmax.f32 %v512_v41, 0.0  ;;  %v541_v51 = vmax.f32 %v459_v42, 0.0  ;;  %v515_v52 = vadd.f32 %v864_v22, %v514_v49 }
 0x103   : > { %589 = vst.msk [vmem:[%s871_s28 + $0xf0] sm:$0xff] %vm558_vm3, %v556_v45  ;;  %571 = vst.msk [vmem:[%s871_s28 + $0x60] sm:$0xff] %vm558_vm3, %v538_v46  ;;  %v557_v53 = vmax.f32 %v523_v47, 0.0  ;;  %v539_v54 = vmax.f32 %v451_v48, 0.0 }
 0x104   : > { %587 = vst.msk [vmem:[%s871_s28 + $0xe0] sm:$0xff] %vm558_vm3, %v554_v50  ;;  %574 = vst.msk [vmem:[%s871_s28 + $0x78] sm:$0xff] %vm558_vm3, %v541_v51  ;;  %v555_v55 = vmax.f32 %v515_v52, 0.0 }
 0x105   : > { %590 = vst.msk [vmem:[%s871_s28 + $0xf8] sm:$0xff] %vm558_vm3, %v557_v53  ;;  %572 = vst.msk [vmem:[%s871_s28 + $0x68] sm:$0xff] %vm558_vm3, %v539_v54 }
 0x106   : > { %588 = vst.msk [vmem:[%s871_s28 + $0xe8] sm:$0xff] %vm558_vm3, %v555_v55 }
 0x107 PF: > { %s13_s12 = sadd.s32 1, %s784_s12  }
 0x108   : > { %p10_p4 = scmp.ge.s32.totalorder %s13_s12, 4  }
 0x10a   :  { %12 = sbr.rel (!%p10_p4) target bundleno = 1 (0x1), region = 62 }

// kernel: autoencoder_forward.6
= control target key start
LH: loop header
LB: loop body
LE: loop exit
PB: predicated region body
PF: predicated region fallthrough
CT: control target
= control target key end

     0   :  { %v395_v0 = vmov 0   ;;  %vm171_vm0 = vcmask 130048   ;;  %vm296_vm1 = vcmask 261120   ;;  %s567_s1 = inlined_call_operand.vmem [shape: bf16[144,32], index: 1, kind: input, shape index: {}]   ;;  %s568_s0 = inlined_call_operand.vmem [shape: bf16[112,144], index: 0, kind: input, shape index: {}]   ;;  %s569_s2 = inlined_call_operand.vmem [shape: f32[1,32], index: 2, kind: input, shape index: {}]   ;;  %s570_s3 = inlined_call_operand.vmem [shape: f32[112,32], index: 3, kind: output, shape index: {}]  }
   0x1   :  { %193 = vmatprep.subr.bf16.mxu0 %v395_v0  ;;  %v365_v1 = vld [vmem:[%s567_s1] sm:$0xff]   ;;  %346 = vmatprep.subr.bf16.mxu1 %v395_v0  ;;  %v366_v2 = vld [vmem:[%s567_s1 + $0x8] sm:$0xff]   ;;  %v367_v3 = vld [vmem:[%s567_s1 + $0x10] sm:$0xff]  }
   0x2   :  { %194 = vmatpush1.bf16.msra.mxu0 %v365_v1  ;;  %355 = vmatpush1.bf16.msra.mxu1 %v365_v1  ;;  %v368_v4 = vld [vmem:[%s567_s1 + $0x18] sm:$0xff]   ;;  %v376_v5 = vld [vmem:[%s568_s0 + $0x4] ss:$8 sps:$4 sm:$0xff]   ;;  %v371_v9 = vld [vmem:[%s567_s1 + $0x30] sm:$0xff]  }
   0x3   :  { %195 = vmatprep.subr.bf16.mxu0 %v395_v0  ;;  %347 = vmatprep.subr.bf16.mxu1 %v395_v0  ;;  %v379_v6 = vld [vmem:[%s568_s0 + $0x44] ss:$8 sps:$4 sm:$0xff]   ;;  %v372_v10 = vld [vmem:[%s567_s1 + $0x38] sm:$0xff]   ;;  %v374_v12 = vld [vmem:[%s568_s0] ss:$8 sps:$4 sm:$0xff]  }
   0x4   :  { %339 = vmatprep.mubr.msk.bf16.mxu0 %vm171_vm0, %v376_v5  ;;  %343 = vmatprep.mubr.msk.bf16.mxu1 %vm171_vm0, %v379_v6  ;;  %v369_v7 = vld [vmem:[%s567_s1 + $0x20] sm:$0xff]   ;;  %v370_v8 = vld [vmem:[%s567_s1 + $0x28] sm:$0xff]   ;;  %v380_v14 = vld [vmem:[%s568_s0 + $0x14] ss:$8 sps:$4 sm:$0xff]  }
   0x5   :  { %v373_v11 = vld [vmem:[%s567_s1 + $0x40] sm:$0xff]   ;;  %v383_v15 = vld [vmem:[%s568_s0 + $0x54] ss:$8 sps:$4 sm:$0xff]   ;;  %v382_v16 = vld [vmem:[%s568_s0 + $0x10] ss:$8 sps:$4 sm:$0xff]  }
   0x6   :  { %196 = vmatpush1.bf16.msra.mxu0 %v366_v2  ;;  %356 = vmatpush1.bf16.msra.mxu1 %v366_v2  ;;  %v377_v13 = vld [vmem:[%s568_s0 + $0x40] ss:$8 sps:$4 sm:$0xff]   ;;  %v385_v17 = vld [vmem:[%s568_s0 + $0x50] ss:$8 sps:$4 sm:$0xff]   ;;  %v386_v18 = vld [vmem:[%s568_s0 + $0x24] ss:$8 sps:$4 sm:$0xff]  }
   0x7   :  { %197 = vmatprep.subr.bf16.mxu0 %v395_v0  ;;  %348 = vmatprep.subr.bf16.mxu1 %v395_v0  ;;  %v389_v19 = vld [vmem:[%s568_s0 + $0x64] ss:$8 sps:$4 sm:$0xff]   ;;  %v388_v20 = vld [vmem:[%s568_s0 + $0x20] ss:$8 sps:$4 sm:$0xff]   ;;  %v392_v22 = vld [vmem:[%s568_s0 + $0x34] ss:$8 sps:$4 sm:$0xff]  }
   0x8   :  { %v391_v21 = vld [vmem:[%s568_s0 + $0x60] ss:$8 sps:$4 sm:$0xff]   ;;  %v394_v23 = vld [vmem:[%s568_s0 + $0x30] ss:$8 sps:$4 sm:$0xff]  }
   0x9   :  { %v495_v24 = vld [vmem:[%s569_s2] ss:$0 sm:$0xff] }
   0xa   :  { %198 = vmatpush1.bf16.msra.mxu0 %v367_v3  ;;  %357 = vmatpush1.bf16.msra.mxu1 %v367_v3 }
   0xb   :  { %199 = vmatprep.subr.bf16.mxu0 %v395_v0  ;;  %349 = vmatprep.subr.bf16.mxu1 %v395_v0 }
   0xe   :  { %200 = vmatpush1.bf16.msra.mxu0 %v368_v4  ;;  %358 = vmatpush1.bf16.msra.mxu1 %v368_v4 }
   0xf   :  { %201 = vmatprep.subr.bf16.mxu0 %v395_v0  ;;  %350 = vmatprep.subr.bf16.mxu1 %v395_v0 }
  0x12   :  { %202 = vmatpush1.bf16.msra.mxu0 %v369_v7  ;;  %359 = vmatpush1.bf16.msra.mxu1 %v369_v7 }
  0x13   :  { %203 = vmatprep.subr.bf16.mxu0 %v395_v0  ;;  %351 = vmatprep.subr.bf16.mxu1 %v395_v0 }
  0x16   :  { %204 = vmatpush1.bf16.msra.mxu0 %v370_v8  ;;  %360 = vmatpush1.bf16.msra.mxu1 %v370_v8 }
  0x17   :  { %205 = vmatprep.subr.bf16.mxu0 %v395_v0  ;;  %352 = vmatprep.subr.bf16.mxu1 %v395_v0 }
  0x1a   :  { %206 = vmatpush1.bf16.msra.mxu0 %v371_v9  ;;  %361 = vmatpush1.bf16.msra.mxu1 %v371_v9 }
  0x1b   :  { %207 = vmatprep.subr.bf16.mxu0 %v395_v0  ;;  %353 = vmatprep.subr.bf16.mxu1 %v395_v0 }
  0x1e   :  { %208 = vmatpush1.bf16.msra.mxu0 %v372_v10  ;;  %362 = vmatpush1.bf16.msra.mxu1 %v372_v10 }
  0x1f   :  { %209 = vmatprep.subr.bf16.mxu0 %v395_v0  ;;  %354 = vmatprep.subr.bf16.mxu1 %v395_v0 }
  0x22   :  { %210 = vmatpush1.bf16.msra.mxu0 %v373_v11  ;;  %363 = vmatpush1.bf16.msra.mxu1 %v373_v11 }
  0x25   :  { %226 = vmatmul.mubr.bf16.vlgmr.msra.gmra.mrb[0].mxu0 %v374_v12  ;;  %258 = vmatmul.mubr.bf16.vlgmr.msra.gmra.mrb[0].mxu1 %v377_v13 }
  0x26   :  { %340 = vmatprep.mubr.msk.bf16.mxu0 %vm171_vm0, %v380_v14  ;;  %344 = vmatprep.mubr.msk.bf16.mxu1 %vm171_vm0, %v383_v15 }
  0x2d   :  { %234 = vmatmul.mubr.bf16.gmra.mrb[4].mxu0 %v382_v16  ;;  %266 = vmatmul.mubr.bf16.gmra.mrb[4].mxu1 %v385_v17 }
  0x2e   :  { %341 = vmatprep.mubr.msk.bf16.mxu0 %vm171_vm0, %v386_v18  ;;  %345 = vmatprep.mubr.msk.bf16.mxu1 %vm171_vm0, %v389_v19 }
  0x35   :  { %242 = vmatmul.mubr.bf16.gmra.mrb[8].mxu0 %v388_v20  ;;  %274 = vmatmul.mubr.bf16.gmra.mrb[8].mxu1 %v391_v21 }
  0x36   :  { %342 = vmatprep.mubr.msk.bf16.mxu0 %vm171_vm0, %v392_v22 }
  0x3d   :  { %250 = vmatmul.mubr.bf16.gmra.mrb[12].mxu0 %v394_v23 }
  0xf8   :  { %v227_v25 = vpop.f32.mrb[0].mxu0  ;;  %v259_v26 = vpop.f32.mrb[0].mxu1 }
  0xf9   :  { %v228_v27 = vadd.f32 %v495_v24, %v227_v25  ;;  %v229_v28 = vpop.f32.mrb[1].mxu0  ;;  %v260_v29 = vadd.f32 %v495_v24, %v259_v26  ;;  %v261_v30 = vpop.f32.mrb[1].mxu1 }
  0xfa   :  { %v230_v31 = vpop.f32.mrb[2].mxu0  ;;  %v262_v32 = vpop.f32.mrb[2].mxu1 }
  0xfb   :  { %v282_v33 = vmax.f32 %v228_v27, 0.0  ;;  %v231_v34 = vadd.f32 %v495_v24, %v230_v31  ;;  %v232_v35 = vpop.f32.mrb[3].mxu0  ;;  %v290_v36 = vmax.f32 %v260_v29, 0.0  ;;  %v263_v37 = vadd.f32 %v495_v24, %v262_v32  ;;  %v264_v38 = vpop.f32.mrb[3].mxu1 }
  0xfd   :  { %297 = vst.msk [vmem:[%s570_s3] sm:$0xff] %vm296_vm1, %v282_v33  ;;  %v283_v39 = vmax.f32 %v231_v34, 0.0  ;;  %305 = vst.msk [vmem:[%s570_s3 + $0x40] sm:$0xff] %vm296_vm1, %v290_v36  ;;  %v291_v40 = vmax.f32 %v263_v37, 0.0 }
  0xff   :  { %298 = vst.msk [vmem:[%s570_s3 + $0x8] sm:$0xff] %vm296_vm1, %v283_v39  ;;  %306 = vst.msk [vmem:[%s570_s3 + $0x48] sm:$0xff] %vm296_vm1, %v291_v40 }
 0x100   :  { %v235_v41 = vpop.f32.mrb[4].mxu0  ;;  %v267_v42 = vpop.f32.mrb[4].mxu1 }
 0x101   :  { %v236_v43 = vadd.f32 %v495_v24, %v235_v41  ;;  %v237_v44 = vpop.f32.mrb[5].mxu0  ;;  %v268_v45 = vadd.f32 %v495_v24, %v267_v42  ;;  %v269_v46 = vpop.f32.mrb[5].mxu1 }
 0x102   :  { %v238_v47 = vpop.f32.mrb[6].mxu0  ;;  %v270_v48 = vpop.f32.mrb[6].mxu1 }
 0x103   :  { %v284_v49 = vmax.f32 %v236_v43, 0.0  ;;  %v239_v50 = vadd.f32 %v495_v24, %v238_v47  ;;  %v240_v51 = vpop.f32.mrb[7].mxu0  ;;  %v292_v52 = vmax.f32 %v268_v45, 0.0  ;;  %v271_v53 = vadd.f32 %v495_v24, %v270_v48  ;;  %v272_v54 = vpop.f32.mrb[7].mxu1 }
 0x105   :  { %299 = vst.msk [vmem:[%s570_s3 + $0x10] sm:$0xff] %vm296_vm1, %v284_v49  ;;  %v285_v55 = vmax.f32 %v239_v50, 0.0  ;;  %307 = vst.msk [vmem:[%s570_s3 + $0x50] sm:$0xff] %vm296_vm1, %v292_v52  ;;  %v293_v56 = vmax.f32 %v271_v53, 0.0 }
 0x107   :  { %300 = vst.msk [vmem:[%s570_s3 + $0x18] sm:$0xff] %vm296_vm1, %v285_v55  ;;  %308 = vst.msk [vmem:[%s570_s3 + $0x58] sm:$0xff] %vm296_vm1, %v293_v56 }
 0x108   :  { %v243_v57 = vpop.f32.mrb[8].mxu0  ;;  %v275_v58 = vpop.f32.mrb[8].mxu1 }
 0x109   :  { %v244_v59 = vadd.f32 %v495_v24, %v243_v57  ;;  %v245_v60 = vpop.f32.mrb[9].mxu0  ;;  %v276_v61 = vadd.f32 %v495_v24, %v275_v58  ;;  %v277_v62 = vpop.f32.mrb[9].mxu1 }
 0x10a   :  { %v246_v63 = vpop.f32.mrb[10].mxu0  ;;  %v278_v0 = vpop.f32.mrb[10].mxu1 }
 0x10b   :  { %v286_v1 = vmax.f32 %v244_v59, 0.0  ;;  %v247_v2 = vadd.f32 %v495_v24, %v246_v63  ;;  %v248_v3 = vpop.f32.mrb[11].mxu0  ;;  %v294_v4 = vmax.f32 %v276_v61, 0.0  ;;  %v279_v5 = vadd.f32 %v495_v24, %v278_v0  ;;  %v280_v6 = vpop.f32.mrb[11].mxu1 }
 0x10d   :  { %301 = vst.msk [vmem:[%s570_s3 + $0x20] sm:$0xff] %vm296_vm1, %v286_v1  ;;  %v287_v7 = vmax.f32 %v247_v2, 0.0  ;;  %309 = vst.msk [vmem:[%s570_s3 + $0x60] sm:$0xff] %vm296_vm1, %v294_v4  ;;  %v295_v8 = vmax.f32 %v279_v5, 0.0 }
 0x10f   :  { %302 = vst.msk [vmem:[%s570_s3 + $0x28] sm:$0xff] %vm296_vm1, %v287_v7  ;;  %310 = vst.msk [vmem:[%s570_s3 + $0x68] sm:$0xff] %vm296_vm1, %v295_v8 }
 0x110   :  { %v251_v9 = vpop.f32.mrb[12].mxu0 }
 0x111   :  { %v252_v10 = vadd.f32 %v495_v24, %v251_v9  ;;  %v253_v11 = vpop.f32.mrb[13].mxu0 }
 0x112   :  { %v254_v12 = vpop.f32.mrb[14].mxu0 }
 0x113   :  { %v288_v13 = vmax.f32 %v252_v10, 0.0  ;;  %v255_v14 = vadd.f32 %v495_v24, %v254_v12  ;;  %v256_v15 = vpop.f32.mrb[15].mxu0 }
 0x115   :  { %303 = vst.msk [vmem:[%s570_s3 + $0x30] sm:$0xff] %vm296_vm1, %v288_v13  ;;  %v289_v16 = vmax.f32 %v255_v14, 0.0 }
 0x117   :  { %304 = vst.msk [vmem:[%s570_s3 + $0x38] sm:$0xff] %vm296_vm1, %v289_v16 }

// kernel: autoencoder_forward.7
= control target key start
LH: loop header
LB: loop body
LE: loop exit
PB: predicated region body
PF: predicated region fallthrough
CT: control target
= control target key end

     0   :  { %vm2460_vm0 = vmmov 0   ;;  %vm891_vm1 = vcmask 261120   ;;  %vm1572_vm2 = vcmask 523264   ;;  %s3133_s1 = inlined_call_operand.vmem [shape: bf16[1568,64], index: 1, kind: input, shape index: {}]   ;;  %s3134_s0 = inlined_call_operand.vmem [shape: bf16[16,1568], index: 0, kind: input, shape index: {}]   ;;  %s3135_s3 = inlined_call_operand.vmem [shape: bf16[64,1568], index: 3, kind: input, shape index: {}]   ;;  %s3136_s2 = inlined_call_operand.vmem [shape: f32[1,64], index: 2, kind: input, shape index: {}]   ;;  %s3137_s4 = inlined_call_operand.vmem [shape: f32[1,1568], index: 4, kind: input, shape index: {}]   ;;  %s3138_s5 = inlined_call_operand.vmem [shape: f32[16,1568], index: 5, kind: output, shape index: {}]  }
   0x1   :  { %v2266_v0 = vld [vmem:[%s3133_s1 + $0x40] sm:$0xff]   ;;  %v2270_v4 = vld [vmem:[%s3133_s1 + $0x48] sm:$0xff]   ;;  %v2274_v8 = vld [vmem:[%s3133_s1 + $0x50] sm:$0xff]  }
   0x2   :  { %v2267_v1 = vld [vmem:[%s3133_s1] sm:$0xff]   ;;  %2103 = vmatprep.subr.bf16.mxu0 %v2266_v0  ;;  %v2271_v5 = vld [vmem:[%s3133_s1 + $0x8] sm:$0xff]   ;;  %v2275_v9 = vld [vmem:[%s3133_s1 + $0x10] sm:$0xff]  }
   0x3   :  { %v2268_v2 = vld [vmem:[%s3133_s1 + $0xc0] sm:$0xff]   ;;  %2104 = vmatpush3.bf16.msra.mxu0 %v2267_v1  ;;  %v2272_v6 = vld [vmem:[%s3133_s1 + $0xc8] sm:$0xff]   ;;  %v2276_v10 = vld [vmem:[%s3133_s1 + $0xd0] sm:$0xff]  }
   0x4   :  { %v2269_v3 = vld [vmem:[%s3133_s1 + $0x80] sm:$0xff]   ;;  %2125 = vmatprep.subr.bf16.mxu1 %v2268_v2  ;;  %2105 = vmatprep.subr.bf16.mxu0 %v2270_v4  ;;  %v2273_v7 = vld [vmem:[%s3133_s1 + $0x88] sm:$0xff]   ;;  %v2277_v11 = vld [vmem:[%s3133_s1 + $0x90] sm:$0xff]  }
   0x5   :  { %2126 = vmatpush3.bf16.msra.mxu1 %v2269_v3  ;;  %v2278_v12 = vld [vmem:[%s3133_s1 + $0x58] sm:$0xff]   ;;  %v2282_v16 = vld [vmem:[%s3133_s1 + $0x60] sm:$0xff]   ;;  %v2286_v20 = vld [vmem:[%s3133_s1 + $0x68] sm:$0xff]  }
   0x6   :  { %2127 = vmatprep.subr.bf16.mxu1 %v2272_v6  ;;  %v2279_v13 = vld [vmem:[%s3133_s1 + $0x18] sm:$0xff]   ;;  %v2283_v17 = vld [vmem:[%s3133_s1 + $0x20] sm:$0xff]   ;;  %v2287_v21 = vld [vmem:[%s3133_s1 + $0x28] sm:$0xff]  }
   0x7   :  { %2106 = vmatpush3.bf16.msra.mxu0 %v2271_v5  ;;  %v2280_v14 = vld [vmem:[%s3133_s1 + $0xd8] sm:$0xff]   ;;  %v2284_v18 = vld [vmem:[%s3133_s1 + $0xe0] sm:$0xff]   ;;  %v2288_v22 = vld [vmem:[%s3133_s1 + $0xe8] sm:$0xff]  }
   0x8   :  { %2107 = vmatprep.subr.bf16.mxu0 %v2274_v8  ;;  %v2281_v15 = vld [vmem:[%s3133_s1 + $0x98] sm:$0xff]   ;;  %v2285_v19 = vld [vmem:[%s3133_s1 + $0xa0] sm:$0xff]   ;;  %v2289_v23 = vld [vmem:[%s3133_s1 + $0xa8] sm:$0xff]  }
   0x9   :  { %2128 = vmatpush3.bf16.msra.mxu1 %v2273_v7  ;;  %v2290_v24 = vld [vmem:[%s3133_s1 + $0x70] sm:$0xff]   ;;  %v2294_v28 = vld [vmem:[%s3133_s1 + $0x78] sm:$0xff]   ;;  %v2301_v34 = vld [vmem:[%s3133_s1 + $0x140] sm:$0xff]  }
   0xa   :  { %2129 = vmatprep.subr.bf16.mxu1 %v2276_v10  ;;  %v2291_v25 = vld [vmem:[%s3133_s1 + $0x30] sm:$0xff]   ;;  %v2295_v29 = vld [vmem:[%s3133_s1 + $0x38] sm:$0xff]   ;;  %v2304_v36 = vld [vmem:[%s3134_s0 + $0xc] ss:$52 sps:$4 sm:$0xff]  }
   0xb   :  { %2108 = vmatpush3.bf16.msra.mxu0 %v2275_v9  ;;  %v2292_v26 = vld [vmem:[%s3133_s1 + $0xf0] sm:$0xff]   ;;  %v2296_v30 = vld [vmem:[%s3133_s1 + $0xf8] sm:$0xff]   ;;  %v2305_v37 = vld [vmem:[%s3133_s1 + $0x100] sm:$0xff]   ;;  %968 = vmatprep.mubr.bf16.mxu1 %v2304_v36 }
   0xc   :  { %2109 = vmatprep.subr.bf16.mxu0 %v2278_v12  ;;  %v2293_v27 = vld [vmem:[%s3133_s1 + $0xb0] sm:$0xff]   ;;  %v2297_v31 = vld [vmem:[%s3133_s1 + $0xb8] sm:$0xff]   ;;  %v2306_v38 = vld [vmem:[%s3133_s1 + $0x1c0] sm:$0xff]  }
   0xd   :  { %2130 = vmatpush3.bf16.msra.mxu1 %v2277_v11  ;;  %v2298_v32 = vld [vmem:[%s3134_s0] ss:$52 sps:$4 sm:$0xff]   ;;  %v2300_v33 = vld [vmem:[%s3134_s0 + $0x4] ss:$52 sps:$4 sm:$0xff]   ;;  %v2302_v35 = vld [vmem:[%s3134_s0 + $0x8] ss:$52 sps:$4 sm:$0xff]  }
   0xe   :  { %2131 = vmatprep.subr.bf16.mxu1 %v2280_v14  ;;  %927 = vmatprep.mubr.bf16.mxu0 %v2300_v33  ;;  %v2307_v39 = vld [vmem:[%s3133_s1 + $0x180] sm:$0xff]   ;;  %v2308_v40 = vld [vmem:[%s3133_s1 + $0x148] sm:$0xff]   ;;  %v2312_v44 = vld [vmem:[%s3133_s1 + $0x150] sm:$0xff]  }
   0xf   :  { %2110 = vmatpush3.bf16.msra.mxu0 %v2279_v13  ;;  %v2309_v41 = vld [vmem:[%s3133_s1 + $0x108] sm:$0xff]   ;;  %v2313_v45 = vld [vmem:[%s3133_s1 + $0x110] sm:$0xff]   ;;  %v2316_v48 = vld [vmem:[%s3133_s1 + $0x158] sm:$0xff]  }
  0x10   :  { %2111 = vmatprep.subr.bf16.mxu0 %v2282_v16  ;;  %v2310_v42 = vld [vmem:[%s3133_s1 + $0x1c8] sm:$0xff]   ;;  %v2314_v46 = vld [vmem:[%s3133_s1 + $0x1d0] sm:$0xff]   ;;  %v2317_v49 = vld [vmem:[%s3133_s1 + $0x118] sm:$0xff]  }
  0x11   :  { %2132 = vmatpush3.bf16.msra.mxu1 %v2281_v15  ;;  %v2311_v43 = vld [vmem:[%s3133_s1 + $0x188] sm:$0xff]   ;;  %v2315_v47 = vld [vmem:[%s3133_s1 + $0x190] sm:$0xff]   ;;  %v2318_v50 = vld [vmem:[%s3133_s1 + $0x1d8] sm:$0xff]  }
  0x12   :  { %2133 = vmatprep.subr.bf16.mxu1 %v2284_v18  ;;  %v2319_v51 = vld [vmem:[%s3133_s1 + $0x198] sm:$0xff]   ;;  %v2320_v52 = vld [vmem:[%s3133_s1 + $0x160] sm:$0xff]   ;;  %v2324_v56 = vld [vmem:[%s3133_s1 + $0x168] sm:$0xff]  }
  0x13   :  { %2112 = vmatpush3.bf16.msra.mxu0 %v2283_v17  ;;  %v2321_v53 = vld [vmem:[%s3133_s1 + $0x120] sm:$0xff]   ;;  %v2325_v57 = vld [vmem:[%s3133_s1 + $0x128] sm:$0xff]   ;;  %v2328_v60 = vld [vmem:[%s3133_s1 + $0x170] sm:$0xff]  }
  0x14   :  { %2113 = vmatprep.subr.bf16.mxu0 %v2286_v20  ;;  %v2322_v54 = vld [vmem:[%s3133_s1 + $0x1e0] sm:$0xff]   ;;  %v2326_v58 = vld [vmem:[%s3133_s1 + $0x1e8] sm:$0xff]   ;;  %v2329_v61 = vld [vmem:[%s3133_s1 + $0x130] sm:$0xff]  }
  0x15   :  { %2134 = vmatpush3.bf16.msra.mxu1 %v2285_v19  ;;  %v2323_v55 = vld [vmem:[%s3133_s1 + $0x1a0] sm:$0xff]   ;;  %v2327_v59 = vld [vmem:[%s3133_s1 + $0x1a8] sm:$0xff]   ;;  %v2330_v62 = vld [vmem:[%s3133_s1 + $0x1f0] sm:$0xff]  }
  0x16   :  { %2135 = vmatprep.subr.bf16.mxu1 %v2288_v22  ;;  %v2331_v63 = vld [vmem:[%s3133_s1 + $0x1b0] sm:$0xff]   ;;  %v2332_v0 = vld [vmem:[%s3133_s1 + $0x178] sm:$0xff]   ;;  %v2339_v6 = vld [vmem:[%s3133_s1 + $0x240] sm:$0xff]  }
  0x17   :  { %2114 = vmatpush3.bf16.msra.mxu0 %v2287_v21  ;;  %v2333_v1 = vld [vmem:[%s3133_s1 + $0x138] sm:$0xff]   ;;  %v2336_v4 = vld [vmem:[%s3134_s0 + $0x10] ss:$52 sps:$4 sm:$0xff]   ;;  %v2338_v5 = vld [vmem:[%s3134_s0 + $0x14] ss:$52 sps:$4 sm:$0xff]  }
  0x18   :  { %2115 = vmatprep.subr.bf16.mxu0 %v2290_v24  ;;  %v2334_v2 = vld [vmem:[%s3133_s1 + $0x1f8] sm:$0xff]   ;;  %v2343_v9 = vld [vmem:[%s3133_s1 + $0x200] sm:$0xff]   ;;  %v2346_v12 = vld [vmem:[%s3133_s1 + $0x248] sm:$0xff]  }
  0x19   :  { %2136 = vmatpush3.bf16.msra.mxu1 %v2289_v23  ;;  %v2335_v3 = vld [vmem:[%s3133_s1 + $0x1b8] sm:$0xff]   ;;  %v2344_v10 = vld [vmem:[%s3133_s1 + $0x2c0] sm:$0xff]   ;;  %v2347_v13 = vld [vmem:[%s3133_s1 + $0x208] sm:$0xff]  }
  0x1a   :  { %2137 = vmatprep.subr.bf16.mxu1 %v2292_v26  ;;  %v2340_v7 = vld [vmem:[%s3134_s0 + $0x18] ss:$52 sps:$4 sm:$0xff]   ;;  %v2342_v8 = vld [vmem:[%s3134_s0 + $0x1c] ss:$52 sps:$4 sm:$0xff]   ;;  %v2345_v11 = vld [vmem:[%s3133_s1 + $0x280] sm:$0xff]  }
  0x1b   :  { %2116 = vmatpush3.bf16.msra.mxu0 %v2291_v25  ;;  %v2348_v14 = vld [vmem:[%s3133_s1 + $0x2c8] sm:$0xff]   ;;  %v2350_v16 = vld [vmem:[%s3133_s1 + $0x250] sm:$0xff]   ;;  %v2354_v20 = vld [vmem:[%s3133_s1 + $0x258] sm:$0xff]  }
  0x1c   :  { %2117 = vmatprep.subr.bf16.mxu0 %v2294_v28  ;;  %v2349_v15 = vld [vmem:[%s3133_s1 + $0x288] sm:$0xff]   ;;  %v2351_v17 = vld [vmem:[%s3133_s1 + $0x210] sm:$0xff]   ;;  %v2355_v21 = vld [vmem:[%s3133_s1 + $0x218] sm:$0xff]  }
  0x1d   :  { %2138 = vmatpush3.bf16.msra.mxu1 %v2293_v27  ;;  %v2352_v18 = vld [vmem:[%s3133_s1 + $0x2d0] sm:$0xff]   ;;  %v2356_v22 = vld [vmem:[%s3133_s1 + $0x2d8] sm:$0xff]   ;;  %v2358_v24 = vld [vmem:[%s3133_s1 + $0x260] sm:$0xff]  }
  0x1e   :  { %2139 = vmatprep.subr.bf16.mxu1 %v2296_v30  ;;  %v2353_v19 = vld [vmem:[%s3133_s1 + $0x290] sm:$0xff]   ;;  %v2357_v23 = vld [vmem:[%s3133_s1 + $0x298] sm:$0xff]   ;;  %v2359_v25 = vld [vmem:[%s3133_s1 + $0x220] sm:$0xff]  }
  0x1f   :  { %2118 = vmatpush3.bf16.msra.mxu0 %v2295_v29  ;;  %v2360_v26 = vld [vmem:[%s3133_s1 + $0x2e0] sm:$0xff]   ;;  %v2362_v28 = vld [vmem:[%s3133_s1 + $0x268] sm:$0xff]   ;;  %v2367_v33 = vld [vmem:[%s3133_s1 + $0x230] sm:$0xff]  }
  0x20   :  { %2147 = vmatprep.subr.bf16.mxu0 %v2301_v34  ;;  %v2361_v27 = vld [vmem:[%s3133_s1 + $0x2a0] sm:$0xff]   ;;  %v2363_v29 = vld [vmem:[%s3133_s1 + $0x228] sm:$0xff]   ;;  %v2368_v34 = vld [vmem:[%s3133_s1 + $0x2f0] sm:$0xff]  }
  0x21   :  { %2140 = vmatpush3.bf16.msra.mxu1 %v2297_v31  ;;  %v2364_v30 = vld [vmem:[%s3133_s1 + $0x2e8] sm:$0xff]   ;;  %v2370_v36 = vld [vmem:[%s3133_s1 + $0x278] sm:$0xff]  }
  0x22   :  { %928 = vmatmul.mubr.bf16.vlgmr.msra.gmra.mrb[0].mxu0 %v2298_v32  ;;  %2169 = vmatprep.subr.bf16.mxu1 %v2306_v38  ;;  %v2365_v31 = vld [vmem:[%s3133_s1 + $0x2a8] sm:$0xff]   ;;  %v2366_v32 = vld [vmem:[%s3133_s1 + $0x270] sm:$0xff]   ;;  %v2372_v38 = vld [vmem:[%s3133_s1 + $0x2f8] sm:$0xff]  }
  0x23   :  { %2148 = vmatpush3.bf16.msra.mxu0 %v2305_v37  ;;  %1009 = vmatprep.mubr.bf16.mxu0 %v2338_v5  ;;  %v2371_v37 = vld [vmem:[%s3133_s1 + $0x238] sm:$0xff]  }
  0x24   :  { %969 = vmatmul.mubr.bf16.vlgmr.msra.gmra.mrb[0].mxu1 %v2302_v35  ;;  %2149 = vmatprep.subr.bf16.mxu0 %v2308_v40  ;;  %v2369_v35 = vld [vmem:[%s3133_s1 + $0x2b0] sm:$0xff]  }
  0x25   :  { %2170 = vmatpush3.bf16.msra.mxu1 %v2307_v39  ;;  %1050 = vmatprep.mubr.bf16.mxu1 %v2342_v8  ;;  %v2373_v39 = vld [vmem:[%s3133_s1 + $0x2b8] sm:$0xff]   ;;  %v2374_v40 = vld [vmem:[%s3134_s0 + $0x20] ss:$52 sps:$4 sm:$0xff]  }
  0x26   :  { %2171 = vmatprep.subr.bf16.mxu1 %v2310_v42  ;;  %v2459_v42 = vmov 0.0  }
  0x27   :  { %2150 = vmatpush3.bf16.msra.mxu0 %v2309_v41  ;;  %v2376_v41 = vld [vmem:[%s3134_s0 + $0x24] ss:$52 sps:$4 sm:$0xff]  }
  0x28   :  { %2151 = vmatprep.subr.bf16.mxu0 %v2312_v44  ;;  %v2379_v44 = vld [vmem:[%s3134_s0 + $0x2c] ss:$52 sps:$4 sm:$0xff]  }
  0x29   :  { %2172 = vmatpush3.bf16.msra.mxu1 %v2311_v43  ;;  %v2377_v43 = vld [vmem:[%s3134_s0 + $0x28] ss:$52 sps:$4 sm:$0xff]  }
  0x2a   :  { %2173 = vmatprep.subr.bf16.mxu1 %v2314_v46  ;;  %v2381_v46 = vld [vmem:[%s3133_s1 + $0x308] sm:$0xff]  }
  0x2b   :  { %2152 = vmatpush3.bf16.msra.mxu0 %v2313_v45  ;;  %v2380_v45 = vld [vmem:[%s3133_s1 + $0x300] sm:$0xff]  }
  0x2c   :  { %2153 = vmatprep.subr.bf16.mxu0 %v2316_v48  ;;  %v2383_v48 = vld [vmem:[%s3135_s3] ss:$52 sps:$4 sm:$0xff]  }
  0x2d   :  { %2174 = vmatpush3.bf16.msra.mxu1 %v2315_v47  ;;  %v2382_v47 = vld [vmem:[%s3134_s0 + $0x30] ss:$52 sps:$4 sm:$0xff]  }
  0x2e   :  { %2175 = vmatprep.subr.bf16.mxu1 %v2318_v50  ;;  %v2386_v50 = vld [vmem:[%s3135_s3 + $0x8] ss:$52 sps:$4 sm:$0xff]  }
  0x2f   :  { %2154 = vmatpush3.bf16.msra.mxu0 %v2317_v49  ;;  %v2385_v49 = vld [vmem:[%s3135_s3 + $0x4] ss:$52 sps:$4 sm:$0xff]  }
  0x30   :  { %2155 = vmatprep.subr.bf16.mxu0 %v2320_v52  ;;  %v2391_v52 = vld [vmem:[%s3135_s3 + $0x6c] ss:$52 sps:$4 sm:$0xff]  }
  0x31   :  { %2176 = vmatpush3.bf16.msra.mxu1 %v2319_v51  ;;  %v2388_v51 = vld [vmem:[%s3135_s3 + $0xc] ss:$52 sps:$4 sm:$0xff]  }
  0x32   :  { %2177 = vmatprep.subr.bf16.mxu1 %v2322_v54  ;;  %v2389_v54 = vld [vmem:[%s3135_s3 + $0x68] ss:$52 sps:$4 sm:$0xff]  }
  0x33   :  { %2156 = vmatpush3.bf16.msra.mxu0 %v2321_v53  ;;  %v2394_v53 = vld [vmem:[%s3135_s3 + $0x74] ss:$52 sps:$4 sm:$0xff]  }
  0x34   :  { %2157 = vmatprep.subr.bf16.mxu0 %v2324_v56  ;;  %v2397_v56 = vld [vmem:[%s3135_s3 + $0xd4] ss:$52 sps:$4 sm:$0xff]  }
  0x35   :  { %2178 = vmatpush3.bf16.msra.mxu1 %v2323_v55  ;;  %v2392_v55 = vld [vmem:[%s3135_s3 + $0x70] ss:$52 sps:$4 sm:$0xff]  }
  0x36   :  { %2179 = vmatprep.subr.bf16.mxu1 %v2326_v58  ;;  %v2395_v58 = vld [vmem:[%s3135_s3 + $0xd0] ss:$52 sps:$4 sm:$0xff]  }
  0x37   :  { %2158 = vmatpush3.bf16.msra.mxu0 %v2325_v57  ;;  %v2400_v57 = vld [vmem:[%s3135_s3 + $0xdc] ss:$52 sps:$4 sm:$0xff]  }
  0x38   :  { %2159 = vmatprep.subr.bf16.mxu0 %v2328_v60  ;;  %v2403_v60 = vld [vmem:[%s3135_s3 + $0x13c] ss:$52 sps:$4 sm:$0xff]  }
  0x39   :  { %2180 = vmatpush3.bf16.msra.mxu1 %v2327_v59  ;;  %v2398_v59 = vld [vmem:[%s3135_s3 + $0xd8] ss:$52 sps:$4 sm:$0xff]  }
  0x3a   :  { %2181 = vmatprep.subr.bf16.mxu1 %v2330_v62  ;;  %v2401_v62 = vld [vmem:[%s3135_s3 + $0x138] ss:$52 sps:$4 sm:$0xff]  }
  0x3b   :  { %2160 = vmatpush3.bf16.msra.mxu0 %v2329_v61  ;;  %v2406_v61 = vld [vmem:[%s3135_s3 + $0x144] ss:$52 sps:$4 sm:$0xff]  }
  0x3c   :  { %2161 = vmatprep.subr.bf16.mxu0 %v2332_v0  ;;  %v2409_v0 = vld [vmem:[%s3135_s3 + $0x14] ss:$52 sps:$4 sm:$0xff]  }
  0x3d   :  { %2182 = vmatpush3.bf16.msra.mxu1 %v2331_v63  ;;  %v2404_v63 = vld [vmem:[%s3135_s3 + $0x140] ss:$52 sps:$4 sm:$0xff]  }
  0x3e   :  { %2183 = vmatprep.subr.bf16.mxu1 %v2334_v2  ;;  %v2412_v2 = vld [vmem:[%s3135_s3 + $0x1c] ss:$52 sps:$4 sm:$0xff]  }
  0x3f   :  { %2162 = vmatpush3.bf16.msra.mxu0 %v2333_v1  ;;  %v2461_v1 = vmov 0  }
  0x40   :  { %2191 = vmatprep.subr.bf16.mxu0 %v2339_v6 }
  0x41   :  { %2184 = vmatpush3.bf16.msra.mxu1 %v2335_v3 }
  0x42   :  { %1010 = vmatmul.mubr.bf16.vlgmr.msra.gmra.mrb[4].mxu0 %v2336_v4  ;;  %2213 = vmatprep.subr.bf16.mxu1 %v2344_v10  ;;  %v1931_v4 = vld [vmem:[%s3136_s2] ss:$0 sm:$0xff] }
  0x43   :  { %2192 = vmatpush3.bf16.msra.mxu0 %v2343_v9  ;;  %1091 = vmatprep.mubr.bf16.mxu0 %v2376_v41 }
  0x44   :  { %1051 = vmatmul.mubr.bf16.vlgmr.msra.gmra.mrb[4].mxu1 %v2340_v7  ;;  %2193 = vmatprep.subr.bf16.mxu0 %v2346_v12 }
  0x45   :  { %2214 = vmatpush3.bf16.msra.mxu1 %v2345_v11  ;;  %1132 = vmatprep.mubr.bf16.mxu1 %v2379_v44 }
  0x46   :  { %2215 = vmatprep.subr.bf16.mxu1 %v2348_v14 }
  0x47   :  { %2194 = vmatpush3.bf16.msra.mxu0 %v2347_v13 }
  0x48   :  { %2195 = vmatprep.subr.bf16.mxu0 %v2350_v16 }
  0x49   :  { %2216 = vmatpush3.bf16.msra.mxu1 %v2349_v15 }
  0x4a   :  { %2217 = vmatprep.subr.bf16.mxu1 %v2352_v18 }
  0x4b   :  { %2196 = vmatpush3.bf16.msra.mxu0 %v2351_v17 }
  0x4c   :  { %2197 = vmatprep.subr.bf16.mxu0 %v2354_v20 }
  0x4d   :  { %2218 = vmatpush3.bf16.msra.mxu1 %v2353_v19 }
  0x4e   :  { %2219 = vmatprep.subr.bf16.mxu1 %v2356_v22 }
  0x4f   :  { %2198 = vmatpush3.bf16.msra.mxu0 %v2355_v21 }
  0x50   :  { %2199 = vmatprep.subr.bf16.mxu0 %v2358_v24 }
  0x51   :  { %2220 = vmatpush3.bf16.msra.mxu1 %v2357_v23 }
  0x52   :  { %2221 = vmatprep.subr.bf16.mxu1 %v2360_v26 }
  0x53   :  { %2200 = vmatpush3.bf16.msra.mxu0 %v2359_v25 }
  0x54   :  { %2201 = vmatprep.subr.bf16.mxu0 %v2362_v28 }
  0x55   :  { %2222 = vmatpush3.bf16.msra.mxu1 %v2361_v27 }
  0x56   :  { %2223 = vmatprep.subr.bf16.mxu1 %v2364_v30 }
  0x57   :  { %2202 = vmatpush3.bf16.msra.mxu0 %v2363_v29 }
  0x58   :  { %2203 = vmatprep.subr.bf16.mxu0 %v2366_v32 }
  0x59   :  { %2224 = vmatpush3.bf16.msra.mxu1 %v2365_v31 }
  0x5a   :  { %2225 = vmatprep.subr.bf16.mxu1 %v2368_v34 }
  0x5b   :  { %2204 = vmatpush3.bf16.msra.mxu0 %v2367_v33 }
  0x5c   :  { %2205 = vmatprep.subr.bf16.mxu0 %v2370_v36 }
  0x5d   :  { %2226 = vmatpush3.bf16.msra.mxu1 %v2369_v35 }
  0x5e   :  { %2227 = vmatprep.subr.bf16.mxu1 %v2372_v38 }
  0x5f   :  { %2206 = vmatpush3.bf16.msra.mxu0 %v2371_v37 }
  0x60   :  { %2243 = vmatprep.subr.bf16.mxu0 %v2459_v42 }
  0x61   :  { %2228 = vmatpush3.bf16.msra.mxu1 %v2373_v39 }
  0x62   :  { %1092 = vmatmul.mubr.bf16.vlgmr.msra.gmra.mrb[8].mxu0 %v2374_v40  ;;  %1576 = vmatprep.subr.bf16.mxu1 %v2385_v49 }
  0x63   :  { %2244 = vmatpush3.bf16.msra.mxu0 %v2380_v45  ;;  %2247 = vmatprep.mubr.msk.bf16.mxu0 %vm2460_vm0, %v2459_v42 }
  0x64   :  { %1133 = vmatmul.mubr.bf16.vlgmr.msra.gmra.mrb[8].mxu1 %v2377_v43  ;;  %2245 = vmatprep.subr.bf16.mxu0 %v2459_v42 }
  0x65   :  { %1577 = vmatpush1.bf16.msra.mxu1 %v2383_v48  ;;  %1608 = vmatprep.mubr.bf16.mxu1 %v2461_v1 }
  0x66   :  { %1578 = vmatprep.subr.bf16.mxu1 %v2391_v52 }
  0x67   :  { %2246 = vmatpush3.bf16.msra.mxu0 %v2381_v46 }
  0x68   :  { %1619 = vmatprep.subr.bf16.mxu0 %v2388_v51 }
  0x69   :  { %1579 = vmatpush1.bf16.msra.mxu1 %v2389_v54 }
  0x6a   :  { %2248 = vmatmul.mubr.msk.bf16.vlgmr.msra.gmra.mrb[12].mxu0 %vm891_vm1, %v2382_v47  ;;  %1580 = vmatprep.subr.bf16.mxu1 %v2397_v56 }
  0x6b   :  { %1620 = vmatpush1.bf16.msra.mxu0 %v2386_v50  ;;  %1651 = vmatprep.mubr.bf16.mxu0 %v2461_v1 }
  0x6c   :  { %1621 = vmatprep.subr.bf16.mxu0 %v2394_v53 }
  0x6d   :  { %1581 = vmatpush1.bf16.msra.mxu1 %v2395_v58 }
  0x6e   :  { %1582 = vmatprep.subr.bf16.mxu1 %v2403_v60  ;;  %v2410_v60 = vld [vmem:[%s3135_s3 + $0x18] ss:$52 sps:$4 sm:$0xff]  }
  0x6f   :  { %1622 = vmatpush1.bf16.msra.mxu0 %v2392_v55 }
  0x70   :  { %1623 = vmatprep.subr.bf16.mxu0 %v2400_v57 }
  0x71   :  { %1583 = vmatpush1.bf16.msra.mxu1 %v2401_v62  ;;  %v2415_v62 = vld [vmem:[%s3135_s3 + $0x7c] ss:$52 sps:$4 sm:$0xff]  }
  0x72   :  { %1662 = vmatprep.subr.bf16.mxu1 %v2409_v0  ;;  %v2413_v0 = vld [vmem:[%s3135_s3 + $0x78] ss:$52 sps:$4 sm:$0xff]  }
  0x73   :  { %1624 = vmatpush1.bf16.msra.mxu0 %v2398_v59  ;;  %v2407_v59 = vld [vmem:[%s3135_s3 + $0x10] ss:$52 sps:$4 sm:$0xff]  }
  0x74   :  { %1625 = vmatprep.subr.bf16.mxu0 %v2406_v61 }
  0x77   :  { %1626 = vmatpush1.bf16.msra.mxu0 %v2404_v63  ;;  %v2418_v63 = vld [vmem:[%s3135_s3 + $0x84] ss:$52 sps:$4 sm:$0xff]  }
  0x78   :  { %1705 = vmatprep.subr.bf16.mxu0 %v2412_v2  ;;  %v2416_v2 = vld [vmem:[%s3135_s3 + $0x80] ss:$52 sps:$4 sm:$0xff]  }
  0xf5   :  { %v2119_v3 = vpop.f32.mrb[0].mxu0 }
  0xf6   :  { %v2120_v5 = vpop.f32.mrb[1].mxu0 }
  0xf7   :  { %v2121_v6 = vadd.f32 %v2120_v5, %v2119_v3  ;;  %v2122_v7 = vpop.f32.mrb[2].mxu0  ;;  %v2141_v8 = vpop.f32.mrb[0].mxu1  ;;  %v2421_v3 = vld [vmem:[%s3135_s3 + $0xe4] ss:$52 sps:$4 sm:$0xff]   ;;  %v2419_v5 = vld [vmem:[%s3135_s3 + $0xe0] ss:$52 sps:$4 sm:$0xff]  }
  0xf8   :  { %v2123_v9 = vpop.f32.mrb[3].mxu0  ;;  %v2142_v10 = vpop.f32.mrb[1].mxu1 }
  0xf9   :  { %v930_v11 = vadd.f32 %v2121_v6, %v1931_v4  ;;  %v2124_v12 = vadd.f32 %v2123_v9, %v2122_v7  ;;  %v2143_v13 = vadd.f32 %v2142_v10, %v2141_v8  ;;  %v2144_v14 = vpop.f32.mrb[2].mxu1  ;;  %v2422_v6 = vld [vmem:[%s3135_s3 + $0xe8] ss:$52 sps:$4 sm:$0xff]   ;;  %v2427_v7 = vld [vmem:[%s3135_s3 + $0x14c] ss:$52 sps:$4 sm:$0xff]  }
  0xfa   :  { %v2145_v15 = vpop.f32.mrb[3].mxu1  ;;  %v2430_v8 = vld [vmem:[%s3135_s3 + $0x154] ss:$52 sps:$4 sm:$0xff]   ;;  %v2428_v10 = vld [vmem:[%s3135_s3 + $0x150] ss:$52 sps:$4 sm:$0xff]  }
  0xfb   :  { %v933_v16 = vadd.f32 %v2124_v12, %v1931_v4  ;;  %v971_v17 = vadd.f32 %v2143_v13, %v930_v11  ;;  %v2146_v18 = vadd.f32 %v2145_v15, %v2144_v14  ;;  %v2424_v4 = vld [vmem:[%s3135_s3 + $0xec] ss:$52 sps:$4 sm:$0xff]   ;;  %v2425_v9 = vld [vmem:[%s3135_s3 + $0x148] ss:$52 sps:$4 sm:$0xff]   ;;  %v2433_v11 = vld [vmem:[%s3135_s3 + $0x24] ss:$52 sps:$4 sm:$0xff]  }
  0xfc   :  { %v2436_v12 = vld [vmem:[%s3135_s3 + $0x2c] ss:$52 sps:$4 sm:$0xff]   ;;  %v2434_v14 = vld [vmem:[%s3135_s3 + $0x28] ss:$52 sps:$4 sm:$0xff]  }
  0xfd   :  { %v974_v19 = vadd.f32 %v2146_v18, %v933_v16  ;;  %v2431_v13 = vld [vmem:[%s3135_s3 + $0x20] ss:$52 sps:$4 sm:$0xff]   ;;  %v2440_v18 = vld [vmem:[%s3135_s3 + $0x90] ss:$52 sps:$4 sm:$0xff]  }
  0xfe   :  { %v2439_v15 = vld [vmem:[%s3135_s3 + $0x8c] ss:$52 sps:$4 sm:$0xff]   ;;  %v2442_v16 = vld [vmem:[%s3135_s3 + $0x94] ss:$52 sps:$4 sm:$0xff]  }
 0x115   :  { %v2163_v20 = vpop.f32.mrb[4].mxu0 }
 0x116   :  { %v2164_v21 = vpop.f32.mrb[5].mxu0 }
 0x117   :  { %v2165_v22 = vadd.f32 %v2164_v21, %v2163_v20  ;;  %v2166_v23 = vpop.f32.mrb[6].mxu0  ;;  %v2185_v24 = vpop.f32.mrb[4].mxu1  ;;  %v2448_v20 = vld [vmem:[%s3135_s3 + $0xfc] ss:$52 sps:$4 sm:$0xff]  }
 0x118   :  { %v2167_v25 = vpop.f32.mrb[7].mxu0  ;;  %v2186_v28 = vpop.f32.mrb[5].mxu1  ;;  %v2443_v21 = vld [vmem:[%s3135_s3 + $0xf0] ss:$52 sps:$4 sm:$0xff]  }
 0x119   :  { %v1012_v26 = vadd.f32 %v2165_v22, %v971_v17  ;;  %v2168_v27 = vadd.f32 %v2167_v25, %v2166_v23  ;;  %v2187_v29 = vadd.f32 %v2186_v28, %v2185_v24  ;;  %v2188_v30 = vpop.f32.mrb[6].mxu1  ;;  %v2437_v17 = vld [vmem:[%s3135_s3 + $0x88] ss:$52 sps:$4 sm:$0xff]   ;;  %v2446_v22 = vld [vmem:[%s3135_s3 + $0xf8] ss:$52 sps:$4 sm:$0xff]  }
 0x11a   :  { %v2189_v32 = vpop.f32.mrb[7].mxu1  ;;  %v2451_v23 = vld [vmem:[%s3135_s3 + $0x15c] ss:$52 sps:$4 sm:$0xff]   ;;  %v2449_v24 = vld [vmem:[%s3135_s3 + $0x158] ss:$52 sps:$4 sm:$0xff]  }
 0x11b   :  { %v1015_v31 = vadd.f32 %v2168_v27, %v974_v19  ;;  %v1053_v33 = vadd.f32 %v2187_v29, %v1012_v26  ;;  %v2190_v34 = vadd.f32 %v2189_v32, %v2188_v30  ;;  %v2445_v19 = vld [vmem:[%s3135_s3 + $0xf4] ss:$52 sps:$4 sm:$0xff]   ;;  %v2455_v26 = vld [vmem:[%s3135_s3 + $0x30] ss:$52 sps:$4 sm:$0xff]   ;;  %v2456_v27 = vld [vmem:[%s3135_s3 + $0x98] ss:$52 sps:$4 sm:$0xff]   ;;  %v1243_v30 = vlaneseq }
 0x11c   :  { %v2452_v25 = vld [vmem:[%s3135_s3 + $0x160] ss:$52 sps:$4 sm:$0xff]   ;;  %v2458_v29 = vld [vmem:[%s3135_s3 + $0x168] ss:$52 sps:$4 sm:$0xff]  }
 0x11d   :  { %v1056_v35 = vadd.f32 %v2190_v34, %v1015_v31  ;;  %v2457_v28 = vld [vmem:[%s3135_s3 + $0x100] ss:$52 sps:$4 sm:$0xff]   ;;  %v3017_v31 = vshrl.u32 %v1243_v30, 7 }
 0x11e   :  { %v1239_v34 = vld [vmem:[%s3137_s4] sm:$0xff] }
 0x11f   :  { %v1245_v32 = vsub.s32 0, %v3017_v31 }
 0x135   :  { %v2207_v36 = vpop.f32.mrb[8].mxu0 }
 0x136   :  { %v2208_v37 = vpop.f32.mrb[9].mxu0 }
 0x137   :  { %v2229_v38 = vpop.f32.mrb[8].mxu1  ;;  %v2209_v39 = vadd.f32 %v2208_v37, %v2207_v36  ;;  %v2210_v40 = vpop.f32.mrb[10].mxu0  ;;  %v1257_v36 = vsub.s32 3, %v3017_v31 }
 0x138   :  { %v2230_v41 = vpop.f32.mrb[9].mxu1  ;;  %v2211_v44 = vpop.f32.mrb[11].mxu0 }
 0x139   :  { %v2231_v43 = vadd.f32 %v2230_v41, %v2229_v38  ;;  %v2232_v45 = vpop.f32.mrb[10].mxu1  ;;  %v1094_v46 = vadd.f32 %v2209_v39, %v1053_v33  ;;  %v2212_v47 = vadd.f32 %v2211_v44, %v2210_v40  ;;  %v1253_v33 = vsub.s32 2, %v3017_v31 }
 0x13a   :  { %v2233_v48 = vpop.f32.mrb[11].mxu1  ;;  %v1258_v39 = vrot.slane %v1239_v34, %v1257_v36 }
 0x13b   :  { %v2234_v49 = vadd.f32 %v2233_v48, %v2232_v45  ;;  %v1097_v50 = vadd.f32 %v2212_v47, %v1056_v35  ;;  %v1135_v51 = vadd.f32 %v2231_v43, %v1094_v46  ;;  %v1249_v35 = vsub.s32 1, %v3017_v31 }
 0x13c   :  { %v1254_v37 = vrot.slane %v1239_v34, %v1253_v33 }
 0x13d   :  { %v1175_v52 = vpop.f32.mrb[12].mxu0  ;;  %v1138_v53 = vadd.f32 %v2234_v49, %v1097_v50  ;;  %v1250_v38 = vrot.slane %v1239_v34, %v1249_v35 }
 0x13e   :  { %v1176_v54 = vadd.f32 %v1175_v52, %v1135_v51  ;;  %v2249_v55 = vpop.f32.mrb[13].mxu0 }
 0x13f   :  { %v1178_v56 = vpop.f32.mrb[14].mxu0 }
 0x140   :  { %v1179_v57 = vadd.f32 %v1178_v56, %v1138_v53  ;;  %v2250_v58 = vpop.f32.mrb[15].mxu0 }
 0x142   :  { %v2895_v61 = vpack.c.bf16 %v1179_v57, %v1176_v54 }
 0x144   :  { %2096 = vmatmul.mubr.msk.bf16.vlgmr.msra.gmra.mrb[12].mxu1 %vm1572_vm2, %v2895_v61  ;;  %2097 = vmatmul.mubr.msk.bf16.vlgmr.msra.gmra.mrb[16].mxu0 %vm1572_vm2, %v2895_v61 }
 0x145   :  { %1663 = vmatpush1.bf16.msra.mxu1 %v2407_v59  ;;  %1706 = vmatpush1.bf16.msra.mxu0 %v2410_v60 }
 0x146   :  { %1664 = vmatprep.subr.bf16.mxu1 %v2415_v62  ;;  %1707 = vmatprep.subr.bf16.mxu0 %v2418_v63 }
 0x147   :  { %1694 = vmatprep.mubr.bf16.mxu1 %v2461_v1  ;;  %1737 = vmatprep.mubr.bf16.mxu0 %v2461_v1 }
 0x149   :  { %1665 = vmatpush1.bf16.msra.mxu1 %v2413_v0  ;;  %1708 = vmatpush1.bf16.msra.mxu0 %v2416_v2  ;;  %v1261_v2 = vsub.s32 4, %v3017_v31 }
 0x14a   :  { %1666 = vmatprep.subr.bf16.mxu1 %v2421_v3  ;;  %1709 = vmatprep.subr.bf16.mxu0 %v2424_v4  ;;  %v1269_v3 = vsub.s32 6, %v3017_v31  ;;  %v1265_v4 = vsub.s32 5, %v3017_v31 }
 0x14d   :  { %1667 = vmatpush1.bf16.msra.mxu1 %v2419_v5  ;;  %1710 = vmatpush1.bf16.msra.mxu0 %v2422_v6  ;;  %v1273_v5 = vsub.s32 7, %v3017_v31  ;;  %v1262_v6 = vrot.slane %v1239_v34, %v1261_v2 }
 0x14e   :  { %1668 = vmatprep.subr.bf16.mxu1 %v2427_v7  ;;  %1711 = vmatprep.subr.bf16.mxu0 %v2430_v8  ;;  %v1270_v7 = vrot.slane %v1239_v34, %v1269_v3  ;;  %v1266_v8 = vrot.slane %v1239_v34, %v1265_v4 }
 0x151   :  { %1669 = vmatpush1.bf16.msra.mxu1 %v2425_v9  ;;  %1712 = vmatpush1.bf16.msra.mxu0 %v2428_v10  ;;  %v1274_v9 = vrot.slane %v1239_v34, %v1273_v5 }
 0x152   :  { %1748 = vmatprep.subr.bf16.mxu1 %v2433_v11  ;;  %1791 = vmatprep.subr.bf16.mxu0 %v2436_v12 }
 0x154   :  { %2098 = vmatmul.mubr.msk.bf16.vlgmr.msra.gmra.mrb[16].mxu1 %vm1572_vm2, %v2895_v61  ;;  %2099 = vmatmul.mubr.msk.bf16.vlgmr.msra.gmra.mrb[20].mxu0 %vm1572_vm2, %v2895_v61 }
 0x155   :  { %1749 = vmatpush1.bf16.msra.mxu1 %v2431_v13  ;;  %1792 = vmatpush1.bf16.msra.mxu0 %v2434_v14 }
 0x156   :  { %1750 = vmatprep.subr.bf16.mxu1 %v2439_v15  ;;  %1793 = vmatprep.subr.bf16.mxu0 %v2442_v16 }
 0x157   :  { %1780 = vmatprep.mubr.bf16.mxu1 %v2461_v1  ;;  %1823 = vmatprep.mubr.bf16.mxu0 %v2461_v1  ;;  %v2454_v1 = vld [vmem:[%s3135_s3 + $0x164] ss:$52 sps:$4 sm:$0xff]  }
 0x159   :  { %1751 = vmatpush1.bf16.msra.mxu1 %v2437_v17  ;;  %1794 = vmatpush1.bf16.msra.mxu0 %v2440_v18 }
 0x15a   :  { %1752 = vmatprep.subr.bf16.mxu1 %v2445_v19  ;;  %1795 = vmatprep.subr.bf16.mxu0 %v2448_v20 }
 0x15d   :  { %1753 = vmatpush1.bf16.msra.mxu1 %v2443_v21  ;;  %1796 = vmatpush1.bf16.msra.mxu0 %v2446_v22 }
 0x15e   :  { %1754 = vmatprep.subr.bf16.mxu1 %v2451_v23  ;;  %1797 = vmatprep.subr.bf16.mxu0 %v2454_v1 }
 0x161   :  { %1755 = vmatpush1.bf16.msra.mxu1 %v2449_v24  ;;  %1798 = vmatpush1.bf16.msra.mxu0 %v2452_v25 }
 0x162   :  { %2251 = vmatprep.subr.bf16.mxu1 %v2459_v42 }
 0x164   :  { %2100 = vmatmul.mubr.msk.bf16.vlgmr.msra.gmra.mrb[20].mxu1 %vm1572_vm2, %v2895_v61  ;;  %2101 = vmatmul.mubr.msk.bf16.vlgmr.msra.gmra.mrb[24].mxu0 %vm1572_vm2, %v2895_v61 }
 0x165   :  { %2252 = vmatpush3.bf16.msra.mxu1 %v2455_v26  ;;  %2259 = vmatprep.mubr.msk.bf16.mxu1 %vm2460_vm0, %v2459_v42 }
 0x166   :  { %2253 = vmatprep.subr.bf16.mxu1 %v2459_v42 }
 0x169   :  { %2254 = vmatpush3.bf16.msra.mxu1 %v2456_v27 }
 0x16a   :  { %2255 = vmatprep.subr.bf16.mxu1 %v2459_v42 }
 0x16d   :  { %2256 = vmatpush3.bf16.msra.mxu1 %v2457_v28 }
 0x16e   :  { %2257 = vmatprep.subr.bf16.mxu1 %v2459_v42  ;;  %v1246_v42 = vrot.slane %v1239_v34, %v1245_v32 }
 0x171   :  { %2258 = vmatpush3.bf16.msra.mxu1 %v2458_v29 }
 0x174   :  { %2260 = vmatmul.mubr.msk.bf16.vlgmr.msra.gmra.mrb[24].mxu1 %vm1572_vm2, %v2895_v61 }
 0x217   :  { %v1610_v40 = vpop.f32.mrb[12].mxu1  ;;  %v1653_v41 = vpop.f32.mrb[16].mxu0 }
 0x218   :  { %v1611_v43 = vadd.f32 %v1610_v40, %v1246_v42  ;;  %v1654_v44 = vadd.f32 %v1653_v41, %v1254_v37  ;;  %v1612_v45 = vpop.f32.mrb[13].mxu1  ;;  %v1655_v46 = vpop.f32.mrb[17].mxu0 }
 0x219   :  { %v1613_v47 = vadd.f32 %v1612_v45, %v1250_v38  ;;  %v1656_v48 = vadd.f32 %v1655_v46, %v1258_v39  ;;  %v1614_v49 = vpop.f32.mrb[14].mxu1  ;;  %v1657_v50 = vpop.f32.mrb[18].mxu0 }
 0x21a   :  { %v1875_v51 = vmax.f32 %v1611_v43, 0.0  ;;  %v1877_v52 = vmax.f32 %v1654_v44, 0.0  ;;  %v1615_v53 = vadd.f32 %v1614_v49, %v1246_v42  ;;  %v1658_v54 = vadd.f32 %v1657_v50, %v1254_v37  ;;  %v1616_v55 = vpop.f32.mrb[15].mxu1  ;;  %v1659_v56 = vpop.f32.mrb[19].mxu0  ;;  %v1240_v37 = vld [vmem:[%s3137_s4 + $0x8] sm:$0x1f] }
 0x21b   :  { %v1876_v57 = vmax.f32 %v1613_v47, 0.0  ;;  %v1878_v58 = vmax.f32 %v1656_v48, 0.0  ;;  %v1617_v59 = vadd.f32 %v1616_v55, %v1250_v38  ;;  %v1660_v60 = vadd.f32 %v1659_v56, %v1258_v39 }
 0x21c   :  { %1901 = vst [vmem:[%s3138_s5] sm:$0xff] %v1875_v51  ;;  %1903 = vst [vmem:[%s3138_s5 + $0x10] sm:$0xff] %v1877_v52  ;;  %v1888_v61 = vmax.f32 %v1615_v53, 0.0  ;;  %v1890_v62 = vmax.f32 %v1658_v54, 0.0  ;;  %v1278_v38 = vrot.slane %v1240_v37, %v1245_v32  ;;  %v1286_v39 = vrot.slane %v1240_v37, %v1253_v33 }
 0x21d   :  { %1902 = vst [vmem:[%s3138_s5 + $0x8] sm:$0xff] %v1876_v57  ;;  %1904 = vst [vmem:[%s3138_s5 + $0x18] sm:$0xff] %v1878_v58  ;;  %v1889_v63 = vmax.f32 %v1617_v59, 0.0  ;;  %v1891_v0 = vmax.f32 %v1660_v60, 0.0  ;;  %v1282_v40 = vrot.slane %v1240_v37, %v1249_v35  ;;  %v1290_v41 = vrot.slane %v1240_v37, %v1257_v36 }
 0x21e   :  { %1914 = vst [vmem:[%s3138_s5 + $0x68] sm:$0xff] %v1888_v61  ;;  %1916 = vst [vmem:[%s3138_s5 + $0x78] sm:$0xff] %v1890_v62 }
 0x21f   :  { %1915 = vst [vmem:[%s3138_s5 + $0x70] sm:$0xff] %v1889_v63  ;;  %1917 = vst [vmem:[%s3138_s5 + $0x80] sm:$0xff] %v1891_v0  ;;  %v1294_v63 = vrot.slane %v1240_v37, %v1261_v2 }
 0x227   :  { %v1696_v10 = vpop.f32.mrb[16].mxu1  ;;  %v1739_v11 = vpop.f32.mrb[20].mxu0 }
 0x228   :  { %v1697_v12 = vadd.f32 %v1696_v10, %v1262_v6  ;;  %v1740_v13 = vadd.f32 %v1739_v11, %v1270_v7  ;;  %v1698_v14 = vpop.f32.mrb[17].mxu1  ;;  %v1741_v15 = vpop.f32.mrb[21].mxu0 }
 0x229   :  { %v1699_v16 = vadd.f32 %v1698_v14, %v1266_v8  ;;  %v1742_v17 = vadd.f32 %v1741_v15, %v1274_v9  ;;  %v1700_v18 = vpop.f32.mrb[18].mxu1  ;;  %v1743_v19 = vpop.f32.mrb[22].mxu0 }
 0x22a   :  { %v1879_v20 = vmax.f32 %v1697_v12, 0.0  ;;  %v1881_v21 = vmax.f32 %v1740_v13, 0.0  ;;  %v1701_v22 = vadd.f32 %v1700_v18, %v1262_v6  ;;  %v1744_v23 = vadd.f32 %v1743_v19, %v1270_v7  ;;  %v1702_v1 = vpop.f32.mrb[19].mxu1  ;;  %v1745_v24 = vpop.f32.mrb[23].mxu0 }
 0x22b   :  { %v1880_v25 = vmax.f32 %v1699_v16, 0.0  ;;  %v1882_v26 = vmax.f32 %v1742_v17, 0.0  ;;  %v1703_v27 = vadd.f32 %v1702_v1, %v1266_v8  ;;  %v1746_v28 = vadd.f32 %v1745_v24, %v1274_v9 }
 0x22c   :  { %1905 = vst [vmem:[%s3138_s5 + $0x20] sm:$0xff] %v1879_v20  ;;  %1907 = vst [vmem:[%s3138_s5 + $0x30] sm:$0xff] %v1881_v21  ;;  %v1892_v29 = vmax.f32 %v1701_v22, 0.0  ;;  %v1894_v30 = vmax.f32 %v1744_v23, 0.0 }
 0x22d   :  { %1906 = vst [vmem:[%s3138_s5 + $0x28] sm:$0xff] %v1880_v25  ;;  %1908 = vst [vmem:[%s3138_s5 + $0x38] sm:$0xff] %v1882_v26  ;;  %v1893_v34 = vmax.f32 %v1703_v27, 0.0  ;;  %v1895_v42 = vmax.f32 %v1746_v28, 0.0 }
 0x22e   :  { %1918 = vst [vmem:[%s3138_s5 + $0x88] sm:$0xff] %v1892_v29  ;;  %1920 = vst [vmem:[%s3138_s5 + $0x98] sm:$0xff] %v1894_v30 }
 0x22f   :  { %1919 = vst [vmem:[%s3138_s5 + $0x90] sm:$0xff] %v1893_v34  ;;  %1921 = vst [vmem:[%s3138_s5 + $0xa0] sm:$0xff] %v1895_v42 }
 0x237   :  { %v1782_v43 = vpop.f32.mrb[20].mxu1  ;;  %v1825_v44 = vpop.f32.mrb[24].mxu0 }
 0x238   :  { %v1783_v45 = vadd.f32 %v1782_v43, %v1278_v38  ;;  %v1826_v46 = vadd.f32 %v1825_v44, %v1286_v39  ;;  %v1784_v47 = vpop.f32.mrb[21].mxu1  ;;  %v1827_v48 = vpop.f32.mrb[25].mxu0 }
 0x239   :  { %v1785_v49 = vadd.f32 %v1784_v47, %v1282_v40  ;;  %v1828_v50 = vadd.f32 %v1827_v48, %v1290_v41  ;;  %v1786_v51 = vpop.f32.mrb[22].mxu1  ;;  %v1829_v52 = vpop.f32.mrb[26].mxu0 }
 0x23a   :  { %v1883_v32 = vmax.f32 %v1783_v45, 0.0  ;;  %v1885_v53 = vmax.f32 %v1826_v46, 0.0  ;;  %v1787_v54 = vadd.f32 %v1786_v51, %v1278_v38  ;;  %v1830_v33 = vadd.f32 %v1829_v52, %v1286_v39  ;;  %v1788_v55 = vpop.f32.mrb[23].mxu1  ;;  %v1831_v56 = vpop.f32.mrb[27].mxu0 }
 0x23b   :  { %v1884_v35 = vmax.f32 %v1785_v49, 0.0  ;;  %v1886_v57 = vmax.f32 %v1828_v50, 0.0  ;;  %v1789_v58 = vadd.f32 %v1788_v55, %v1282_v40  ;;  %v1832_v36 = vadd.f32 %v1831_v56, %v1290_v41 }
 0x23c   :  { %1909 = vst [vmem:[%s3138_s5 + $0x40] sm:$0xff] %v1883_v32  ;;  %1911 = vst [vmem:[%s3138_s5 + $0x50] sm:$0xff] %v1885_v53  ;;  %v1896_v59 = vmax.f32 %v1787_v54, 0.0  ;;  %v1898_v60 = vmax.f32 %v1830_v33, 0.0 }
 0x23d   :  { %1910 = vst [vmem:[%s3138_s5 + $0x48] sm:$0xff] %v1884_v35  ;;  %1912 = vst [vmem:[%s3138_s5 + $0x58] sm:$0xff] %v1886_v57  ;;  %v1897_v61 = vmax.f32 %v1789_v58, 0.0  ;;  %v1899_v62 = vmax.f32 %v1832_v36, 0.0 }
 0x23e   :  { %1922 = vst [vmem:[%s3138_s5 + $0xa8] sm:$0xff] %v1896_v59  ;;  %1924 = vst [vmem:[%s3138_s5 + $0xb8] sm:$0xff] %v1898_v60 }
 0x23f   :  { %1923 = vst [vmem:[%s3138_s5 + $0xb0] sm:$0xff] %v1897_v61  ;;  %1925 = vst [vmem:[%s3138_s5 + $0xc0] sm:$0xff] %v1899_v62 }
 0x247   :  { %v1868_v0 = vpop.f32.mrb[24].mxu1 }
 0x248   :  { %v1869_v3 = vadd.f32 %v1868_v0, %v1294_v63  ;;  %v2261_v4 = vpop.f32.mrb[25].mxu1 }
 0x249   :  { %v1871_v5 = vpop.f32.mrb[26].mxu1 }
 0x24a   :  { %v1887_v6 = vmax.f32 %v1869_v3, 0.0  ;;  %v1872_v7 = vadd.f32 %v1871_v5, %v1294_v63  ;;  %v2262_v8 = vpop.f32.mrb[27].mxu1 }
 0x24c   :  { %1913 = vst.msk [vmem:[%s3138_s5 + $0x60] sm:$0xff] %vm891_vm1, %v1887_v6  ;;  %v1900_v9 = vmax.f32 %v1872_v7, 0.0 }
 0x24e   :  { %1926 = vst.msk [vmem:[%s3138_s5 + $0xc8] sm:$0xff] %vm891_vm1, %v1900_v9 }

// kernel: autoencoder_forward.8
= control target key start
LH: loop header
LB: loop body
LE: loop exit
PB: predicated region body
PF: predicated region fallthrough
CT: control target
= control target key end

     0   :  { %v372_v0 = vmov 0.0   ;;  %vm373_vm0 = vmmov 0   ;;  %vm245_vm1 = vcmask 523264   ;;  %s521_s1 = inlined_call_operand.vmem [shape: bf16[128,64], index: 1, kind: input, shape index: {}]   ;;  %s522_s0 = inlined_call_operand.vmem [shape: bf16[112,128], index: 0, kind: input, shape index: {}]   ;;  %s523_s2 = inlined_call_operand.vmem [shape: f32[1,64], index: 2, kind: input, shape index: {}]   ;;  %s524_s3 = inlined_call_operand.vmem [shape: f32[112,64], index: 3, kind: output, shape index: {}]  }
   0x1   :  { %295 = vmatprep.subr.bf16.mxu0 %v372_v0  ;;  %v357_v1 = vld [vmem:[%s521_s1] sm:$0xff]   ;;  %339 = vmatprep.subr.bf16.mxu1 %v372_v0  ;;  %v358_v2 = vld [vmem:[%s521_s1 + $0x8] sm:$0xff]   ;;  %v359_v3 = vld [vmem:[%s521_s1 + $0x10] sm:$0xff]  }
   0x2   :  { %311 = vmatprep.mubr.msk.bf16.mxu0 %vm373_vm0, %v372_v0  ;;  %327 = vmatprep.mubr.msk.bf16.mxu1 %vm373_vm0, %v372_v0  ;;  %v360_v4 = vld [vmem:[%s521_s1 + $0x18] sm:$0xff]   ;;  %v361_v5 = vld [vmem:[%s521_s1 + $0x20] sm:$0xff]   ;;  %v362_v6 = vld [vmem:[%s521_s1 + $0x28] sm:$0xff]  }
   0x3   :  { %296 = vmatpush3.bf16.msra.mxu0 %v357_v1  ;;  %347 = vmatpush3.bf16.msra.mxu1 %v357_v1  ;;  %v363_v7 = vld [vmem:[%s521_s1 + $0x30] sm:$0xff]   ;;  %v364_v8 = vld [vmem:[%s521_s1 + $0x38] sm:$0xff]   ;;  %v365_v9 = vld [vmem:[%s522_s0] sm:$0xff]  }
   0x4   :  { %297 = vmatprep.subr.bf16.mxu0 %v372_v0  ;;  %340 = vmatprep.subr.bf16.mxu1 %v372_v0  ;;  %v366_v10 = vld [vmem:[%s522_s0 + $0x20] sm:$0xff]   ;;  %v367_v11 = vld [vmem:[%s522_s0 + $0x8] sm:$0xff]   ;;  %v369_v13 = vld [vmem:[%s522_s0 + $0x10] sm:$0xff]  }
   0x5   :  { %v368_v12 = vld [vmem:[%s522_s0 + $0x28] sm:$0xff]   ;;  %v370_v14 = vld [vmem:[%s522_s0 + $0x30] sm:$0xff]   ;;  %v371_v15 = vld [vmem:[%s522_s0 + $0x18] sm:$0xff]  }
   0x6   :  { %v449_v16 = vld [vmem:[%s523_s2] ss:$0 sm:$0xff] }
   0x7   :  { %298 = vmatpush3.bf16.msra.mxu0 %v358_v2  ;;  %348 = vmatpush3.bf16.msra.mxu1 %v358_v2 }
   0x8   :  { %299 = vmatprep.subr.bf16.mxu0 %v372_v0  ;;  %341 = vmatprep.subr.bf16.mxu1 %v372_v0 }
   0xb   :  { %300 = vmatpush3.bf16.msra.mxu0 %v359_v3  ;;  %349 = vmatpush3.bf16.msra.mxu1 %v359_v3 }
   0xc   :  { %301 = vmatprep.subr.bf16.mxu0 %v372_v0  ;;  %342 = vmatprep.subr.bf16.mxu1 %v372_v0 }
   0xf   :  { %302 = vmatpush3.bf16.msra.mxu0 %v360_v4  ;;  %350 = vmatpush3.bf16.msra.mxu1 %v360_v4 }
  0x10   :  { %303 = vmatprep.subr.bf16.mxu0 %v372_v0  ;;  %343 = vmatprep.subr.bf16.mxu1 %v372_v0 }
  0x13   :  { %304 = vmatpush3.bf16.msra.mxu0 %v361_v5  ;;  %351 = vmatpush3.bf16.msra.mxu1 %v361_v5 }
  0x14   :  { %305 = vmatprep.subr.bf16.mxu0 %v372_v0  ;;  %344 = vmatprep.subr.bf16.mxu1 %v372_v0 }
  0x17   :  { %306 = vmatpush3.bf16.msra.mxu0 %v362_v6  ;;  %352 = vmatpush3.bf16.msra.mxu1 %v362_v6 }
  0x18   :  { %307 = vmatprep.subr.bf16.mxu0 %v372_v0  ;;  %345 = vmatprep.subr.bf16.mxu1 %v372_v0 }
  0x1b   :  { %308 = vmatpush3.bf16.msra.mxu0 %v363_v7  ;;  %353 = vmatpush3.bf16.msra.mxu1 %v363_v7 }
  0x1c   :  { %309 = vmatprep.subr.bf16.mxu0 %v372_v0  ;;  %346 = vmatprep.subr.bf16.mxu1 %v372_v0 }
  0x1f   :  { %310 = vmatpush3.bf16.msra.mxu0 %v364_v8  ;;  %354 = vmatpush3.bf16.msra.mxu1 %v364_v8 }
  0x22   :  { %312 = vmatmul.mubr.bf16.vlgmr.msra.gmra.mrb[0].mxu0 %v365_v9  ;;  %328 = vmatmul.mubr.bf16.vlgmr.msra.gmra.mrb[0].mxu1 %v366_v10 }
  0x23   :  { %315 = vmatprep.mubr.msk.bf16.mxu0 %vm373_vm0, %v372_v0  ;;  %331 = vmatprep.mubr.msk.bf16.mxu1 %vm373_vm0, %v372_v0 }
  0x2a   :  { %316 = vmatmul.mubr.bf16.gmra.mrb[4].mxu0 %v367_v11  ;;  %332 = vmatmul.mubr.bf16.gmra.mrb[4].mxu1 %v368_v12 }
  0x2b   :  { %319 = vmatprep.mubr.msk.bf16.mxu0 %vm373_vm0, %v372_v0  ;;  %335 = vmatprep.mubr.msk.bf16.mxu1 %vm373_vm0, %v372_v0 }
  0x32   :  { %320 = vmatmul.mubr.bf16.gmra.mrb[8].mxu0 %v369_v13  ;;  %336 = vmatmul.mubr.bf16.gmra.mrb[8].mxu1 %v370_v14 }
  0x33   :  { %323 = vmatprep.mubr.msk.bf16.mxu0 %vm373_vm0, %v372_v0 }
  0x3a   :  { %324 = vmatmul.mubr.bf16.gmra.mrb[12].mxu0 %v371_v15 }
  0xf5   :  { %v176_v17 = vpop.f32.mrb[0].mxu0  ;;  %v208_v18 = vpop.f32.mrb[0].mxu1 }
  0xf6   :  { %v177_v19 = vadd.f32 %v449_v16, %v176_v17  ;;  %v313_v20 = vpop.f32.mrb[1].mxu0  ;;  %v209_v21 = vadd.f32 %v449_v16, %v208_v18  ;;  %v329_v22 = vpop.f32.mrb[1].mxu1 }
  0xf7   :  { %v179_v23 = vpop.f32.mrb[2].mxu0  ;;  %v211_v24 = vpop.f32.mrb[2].mxu1 }
  0xf8   :  { %v231_v25 = vmax.f32 %v177_v19, 0.0  ;;  %v180_v26 = vadd.f32 %v449_v16, %v179_v23  ;;  %v314_v27 = vpop.f32.mrb[3].mxu0  ;;  %v239_v28 = vmax.f32 %v209_v21, 0.0  ;;  %v212_v29 = vadd.f32 %v449_v16, %v211_v24  ;;  %v330_v30 = vpop.f32.mrb[3].mxu1 }
  0xfa   :  { %246 = vst.msk [vmem:[%s524_s3] sm:$0xff] %vm245_vm1, %v231_v25  ;;  %v232_v31 = vmax.f32 %v180_v26, 0.0  ;;  %254 = vst.msk [vmem:[%s524_s3 + $0x40] sm:$0xff] %vm245_vm1, %v239_v28  ;;  %v240_v32 = vmax.f32 %v212_v29, 0.0 }
  0xfc   :  { %247 = vst.msk [vmem:[%s524_s3 + $0x8] sm:$0xff] %vm245_vm1, %v232_v31  ;;  %255 = vst.msk [vmem:[%s524_s3 + $0x48] sm:$0xff] %vm245_vm1, %v240_v32 }
  0xfd   :  { %v184_v33 = vpop.f32.mrb[4].mxu0  ;;  %v216_v34 = vpop.f32.mrb[4].mxu1 }
  0xfe   :  { %v185_v35 = vadd.f32 %v449_v16, %v184_v33  ;;  %v317_v36 = vpop.f32.mrb[5].mxu0  ;;  %v217_v37 = vadd.f32 %v449_v16, %v216_v34  ;;  %v333_v38 = vpop.f32.mrb[5].mxu1 }
  0xff   :  { %v187_v39 = vpop.f32.mrb[6].mxu0  ;;  %v219_v40 = vpop.f32.mrb[6].mxu1 }
 0x100   :  { %v233_v41 = vmax.f32 %v185_v35, 0.0  ;;  %v188_v42 = vadd.f32 %v449_v16, %v187_v39  ;;  %v318_v43 = vpop.f32.mrb[7].mxu0  ;;  %v241_v44 = vmax.f32 %v217_v37, 0.0  ;;  %v220_v45 = vadd.f32 %v449_v16, %v219_v40  ;;  %v334_v46 = vpop.f32.mrb[7].mxu1 }
 0x102   :  { %248 = vst.msk [vmem:[%s524_s3 + $0x10] sm:$0xff] %vm245_vm1, %v233_v41  ;;  %v234_v47 = vmax.f32 %v188_v42, 0.0  ;;  %256 = vst.msk [vmem:[%s524_s3 + $0x50] sm:$0xff] %vm245_vm1, %v241_v44  ;;  %v242_v48 = vmax.f32 %v220_v45, 0.0 }
 0x104   :  { %249 = vst.msk [vmem:[%s524_s3 + $0x18] sm:$0xff] %vm245_vm1, %v234_v47  ;;  %257 = vst.msk [vmem:[%s524_s3 + $0x58] sm:$0xff] %vm245_vm1, %v242_v48 }
 0x105   :  { %v192_v49 = vpop.f32.mrb[8].mxu0  ;;  %v224_v50 = vpop.f32.mrb[8].mxu1 }
 0x106   :  { %v193_v51 = vadd.f32 %v449_v16, %v192_v49  ;;  %v321_v52 = vpop.f32.mrb[9].mxu0  ;;  %v225_v53 = vadd.f32 %v449_v16, %v224_v50  ;;  %v337_v54 = vpop.f32.mrb[9].mxu1 }
 0x107   :  { %v195_v55 = vpop.f32.mrb[10].mxu0  ;;  %v227_v56 = vpop.f32.mrb[10].mxu1 }
 0x108   :  { %v235_v57 = vmax.f32 %v193_v51, 0.0  ;;  %v196_v58 = vadd.f32 %v449_v16, %v195_v55  ;;  %v322_v59 = vpop.f32.mrb[11].mxu0  ;;  %v243_v60 = vmax.f32 %v225_v53, 0.0  ;;  %v228_v61 = vadd.f32 %v449_v16, %v227_v56  ;;  %v338_v62 = vpop.f32.mrb[11].mxu1 }
 0x10a   :  { %250 = vst.msk [vmem:[%s524_s3 + $0x20] sm:$0xff] %vm245_vm1, %v235_v57  ;;  %v236_v63 = vmax.f32 %v196_v58, 0.0  ;;  %258 = vst.msk [vmem:[%s524_s3 + $0x60] sm:$0xff] %vm245_vm1, %v243_v60  ;;  %v244_v0 = vmax.f32 %v228_v61, 0.0 }
 0x10c   :  { %251 = vst.msk [vmem:[%s524_s3 + $0x28] sm:$0xff] %vm245_vm1, %v236_v63  ;;  %259 = vst.msk [vmem:[%s524_s3 + $0x68] sm:$0xff] %vm245_vm1, %v244_v0 }
 0x10d   :  { %v200_v1 = vpop.f32.mrb[12].mxu0 }
 0x10e   :  { %v201_v2 = vadd.f32 %v449_v16, %v200_v1  ;;  %v325_v3 = vpop.f32.mrb[13].mxu0 }
 0x10f   :  { %v203_v4 = vpop.f32.mrb[14].mxu0 }
 0x110   :  { %v237_v5 = vmax.f32 %v201_v2, 0.0  ;;  %v204_v6 = vadd.f32 %v449_v16, %v203_v4  ;;  %v326_v7 = vpop.f32.mrb[15].mxu0 }
 0x112   :  { %252 = vst.msk [vmem:[%s524_s3 + $0x30] sm:$0xff] %vm245_vm1, %v237_v5  ;;  %v238_v8 = vmax.f32 %v204_v6, 0.0 }
 0x114   :  { %253 = vst.msk [vmem:[%s524_s3 + $0x38] sm:$0xff] %vm245_vm1, %v238_v8 }

// kernel: autoencoder_forward.9
= control target key start
LH: loop header
LB: loop body
LE: loop exit
PB: predicated region body
PF: predicated region fallthrough
CT: control target
= control target key end

     0   :  { %s893_s12 = smov 0   ;;  %s1063_s0 = inlined_call_operand.vmem [shape: bf16[512,64], index: 0, kind: input, shape index: {}]   ;;  %s1064_s1 = inlined_call_operand.vmem [shape: bf16[64,12], index: 1, kind: input, shape index: {}]   ;;  %s1065_s2 = inlined_call_operand.vmem [shape: f32[1,12], index: 2, kind: input, shape index: {}]   ;;  %s1066_s3 = inlined_call_operand.vmem [shape: f32[512,12], index: 3, kind: output, shape index: {}]  }
   0x1 LB: > { %s657_s13 = sadd.s32 4294967295, %s871_s12   ;;  %p661_p0 = scmp.ge.s32.totalorder %s871_s12, 1  ;;  %s871_s12 = sphi %s893_s12, %s13_s12  }
   0x2   : > { %p138_p1 = scmp.lt.s32.totalorder %s871_s12, 3 }
   0x4   : > { %p139_p2 = pnand %p661_p0, %p138_p1 }
   0x5   : > { %v781_v0 = vld [vmem:[%s1064_s1] sm:$0xff] (!%p139_p2)   ;;  %s662_s16 = sshll.u32 (!%p139_p2), %s657_s13, 5  ;;  %v782_v1 = vld [vmem:[%s1064_s1 + $0x8] sm:$0xff] (!%p139_p2)   ;;  %v783_v2 = vld [vmem:[%s1064_s1 + $0x10] sm:$0xff] (!%p139_p2)   ;;  %vm326_vm0 = vcmask (!%p139_p2), 523264   ;;  %vm568_vm1 = vcmask (!%p139_p2), 97280  }
   0x6   : > { %142 = sbr.rel (%p139_p2) target bundleno = 282 (0x11a), region = 32  ;;  %p163_p3 = scmp.lt.s32.totalorder (!%p139_p2), %s662_s16, 63  ;;  %725 = vmatprep.subr.bf16.mxu0 (!%p139_p2), %v781_v0  ;;  %765 = vmatprep.subr.bf16.mxu1 (!%p139_p2), %v781_v0  ;;  %v784_v3 = vld [vmem:[%s1064_s1 + $0x18] sm:$0xff] (!%p139_p2)   ;;  %v956_v20 = vld [vmem:[%s1065_s2] ss:$0 sm:$0xff] (!%p139_p2) }
   0x7   : > { %726 = vmatpush3.bf16.msra.mxu0 (!%p139_p2), %v781_v0  ;;  %769 = vmatpush3.bf16.msra.mxu1 (!%p139_p2), %v781_v0 }
   0x8   : > { %727 = vmatprep.subr.bf16.mxu0 (!%p139_p2), %v782_v1  ;;  %766 = vmatprep.subr.bf16.mxu1 (!%p139_p2), %v782_v1 }
   0xb   : > { %728 = vmatpush3.bf16.msra.mxu0 (!%p139_p2), %v782_v1  ;;  %770 = vmatpush3.bf16.msra.mxu1 (!%p139_p2), %v782_v1 }
   0xc   : > { %729 = vmatprep.subr.bf16.mxu0 (!%p139_p2), %v783_v2  ;;  %767 = vmatprep.subr.bf16.mxu1 (!%p139_p2), %v783_v2 }
   0xd   : > { %s1068_s16 = smov (!%p163_p3, %s662_s16), 63 }
   0xe   : > { %s663_s21 = sshll.u32 %s1068_s16, 2  ;;  %s665_s29 = sshll.u32 %s1068_s16, 3 }
   0xf   : > { %s919_s26 = scalar_lea.vmem %s1063_s0, %s663_s21  ;;  %730 = vmatpush3.bf16.msra.mxu0 %v783_v2  ;;  %771 = vmatpush3.bf16.msra.mxu1 %v783_v2  ;;  %s974_s5 = scalar_lea.vmem %s1066_s3, %s665_s29 }
  0x10   : > { %v785_v4 = vld [vmem:[%s919_s26] sm:$0xff]   ;;  %731 = vmatprep.subr.bf16.mxu0 %v784_v3  ;;  %768 = vmatprep.subr.bf16.mxu1 %v784_v3  ;;  %v787_v6 = vld [vmem:[%s919_s26 + $0x8] sm:$0xff]   ;;  %v789_v8 = vld [vmem:[%s919_s26 + $0x10] sm:$0xff]  }
  0x11   : > { %v786_v5 = vld [vmem:[%s919_s26 + $0x40] sm:$0xff]   ;;  %733 = vmatprep.mubr.msk.bf16.mxu0 %vm326_vm0, %v785_v4  ;;  %v788_v7 = vld [vmem:[%s919_s26 + $0x48] sm:$0xff]   ;;  %v790_v9 = vld [vmem:[%s919_s26 + $0x50] sm:$0xff]  }
  0x12   : > { %749 = vmatprep.mubr.msk.bf16.mxu1 %vm326_vm0, %v786_v5  ;;  %v791_v10 = vld [vmem:[%s919_s26 + $0x18] sm:$0xff]   ;;  %v793_v12 = vld [vmem:[%s919_s26 + $0x20] sm:$0xff]   ;;  %v795_v14 = vld [vmem:[%s919_s26 + $0x28] sm:$0xff]  }
  0x13   : > { %732 = vmatpush3.bf16.msra.mxu0 %v784_v3  ;;  %772 = vmatpush3.bf16.msra.mxu1 %v784_v3  ;;  %v792_v11 = vld [vmem:[%s919_s26 + $0x58] sm:$0xff]   ;;  %v794_v13 = vld [vmem:[%s919_s26 + $0x60] sm:$0xff]   ;;  %v796_v15 = vld [vmem:[%s919_s26 + $0x68] sm:$0xff]  }
  0x14   : > { %v797_v16 = vld [vmem:[%s919_s26 + $0x30] sm:$0xff]   ;;  %v799_v18 = vld [vmem:[%s919_s26 + $0x38] sm:$0xff]  }
  0x15   : > { %v798_v17 = vld [vmem:[%s919_s26 + $0x70] sm:$0xff]   ;;  %v800_v19 = vld [vmem:[%s919_s26 + $0x78] sm:$0xff]  }
  0x16   : > { %734 = vmatmul.mubr.msk.bf16.vlgmr.msra.gmra.mrb[0].mxu0 %vm326_vm0, %v787_v6  ;;  %750 = vmatmul.mubr.msk.bf16.vlgmr.msra.gmra.mrb[0].mxu1 %vm326_vm0, %v788_v7 }
  0x17   : > { %737 = vmatprep.mubr.msk.bf16.mxu0 %vm326_vm0, %v789_v8  ;;  %753 = vmatprep.mubr.msk.bf16.mxu1 %vm326_vm0, %v790_v9 }
  0x1e   : > { %738 = vmatmul.mubr.msk.bf16.gmra.mrb[4].mxu0 %vm326_vm0, %v791_v10  ;;  %754 = vmatmul.mubr.msk.bf16.gmra.mrb[4].mxu1 %vm326_vm0, %v792_v11 }
  0x1f   : > { %741 = vmatprep.mubr.msk.bf16.mxu0 %vm326_vm0, %v793_v12  ;;  %757 = vmatprep.mubr.msk.bf16.mxu1 %vm326_vm0, %v794_v13 }
  0x26   : > { %742 = vmatmul.mubr.msk.bf16.gmra.mrb[8].mxu0 %vm326_vm0, %v795_v14  ;;  %758 = vmatmul.mubr.msk.bf16.gmra.mrb[8].mxu1 %vm326_vm0, %v796_v15 }
  0x27   : > { %745 = vmatprep.mubr.msk.bf16.mxu0 %vm326_vm0, %v797_v16  ;;  %761 = vmatprep.mubr.msk.bf16.mxu1 %vm326_vm0, %v798_v17 }
  0x2e   : > { %746 = vmatmul.mubr.msk.bf16.gmra.mrb[12].mxu0 %vm326_vm0, %v799_v18  ;;  %762 = vmatmul.mubr.msk.bf16.gmra.mrb[12].mxu1 %vm326_vm0, %v800_v19 }
  0xe9   : > { %v735_v21 = vpop.f32.mrb[0].mxu0  ;;  %v751_v22 = vpop.f32.mrb[0].mxu1 }
  0xea   : > { %v418_v23 = vadd.f32 %v735_v21, %v956_v20  ;;  %v482_v24 = vadd.f32 %v751_v22, %v956_v20  ;;  %v409_v25 = vpop.f32.mrb[1].mxu0  ;;  %v473_v26 = vpop.f32.mrb[1].mxu1 }
  0xeb   : > { %v410_v27 = vadd.f32 %v956_v20, %v409_v25  ;;  %v474_v28 = vadd.f32 %v956_v20, %v473_v26  ;;  %v736_v29 = vpop.f32.mrb[2].mxu0  ;;  %v752_v30 = vpop.f32.mrb[2].mxu1 }
  0xec   : > { %801 = vtanh.f32 %v418_v23  ;;  %v421_v31 = vadd.f32 %v736_v29, %v956_v20  ;;  %v412_v32 = vpop.f32.mrb[3].mxu0  ;;  %v476_v33 = vpop.f32.mrb[3].mxu1  ;;  %v485_v34 = vadd.f32 %v752_v30, %v956_v20 }
  0xed   : > { %803 = vtanh.f32 %v482_v24  ;;  %v413_v35 = vadd.f32 %v956_v20, %v412_v32  ;;  %v477_v36 = vadd.f32 %v956_v20, %v476_v33 }
  0xee   : > { %805 = vtanh.f32 %v410_v27 }
  0xef   : > { %807 = vtanh.f32 %v474_v28 }
  0xf0   : > { %809 = vtanh.f32 %v421_v31 }
  0xf1   : > { %811 = vtanh.f32 %v485_v34  ;;  %v739_v37 = vpop.f32.mrb[4].mxu0  ;;  %v755_v38 = vpop.f32.mrb[4].mxu1 }
  0xf2   : > { %813 = vtanh.f32 %v413_v35  ;;  %v434_v39 = vadd.f32 %v739_v37, %v956_v20  ;;  %v498_v40 = vadd.f32 %v755_v38, %v956_v20  ;;  %v425_v41 = vpop.f32.mrb[5].mxu0  ;;  %v489_v42 = vpop.f32.mrb[5].mxu1 }
  0xf3   : > { %815 = vtanh.f32 %v477_v36  ;;  %v426_v43 = vadd.f32 %v956_v20, %v425_v41  ;;  %v490_v44 = vadd.f32 %v956_v20, %v489_v42  ;;  %v740_v45 = vpop.f32.mrb[6].mxu0  ;;  %v756_v46 = vpop.f32.mrb[6].mxu1 }
  0xf4   : > { %817 = vtanh.f32 %v434_v39  ;;  %v437_v47 = vadd.f32 %v740_v45, %v956_v20  ;;  %v428_v48 = vpop.f32.mrb[7].mxu0  ;;  %v492_v49 = vpop.f32.mrb[7].mxu1  ;;  %v501_v50 = vadd.f32 %v756_v46, %v956_v20 }
  0xf5   : > { %819 = vtanh.f32 %v498_v40  ;;  %v429_v52 = vadd.f32 %v956_v20, %v428_v48  ;;  %v493_v54 = vadd.f32 %v956_v20, %v492_v49 }
  0xf6   : > { %v802_v51 = vpop.eup %801  ;;  %821 = vtanh.f32 %v426_v43 }
  0xf7   : > { %v804_v53 = vpop.eup %803  ;;  %571 = vst.msk [vmem:[%s974_s5 + $0x10] sm:$0xff] %vm568_vm1, %v802_v51  ;;  %823 = vtanh.f32 %v490_v44 }
  0xf8   : > { %v806_v55 = vpop.eup %805  ;;  %587 = vst.msk [vmem:[%s974_s5 + $0x90] sm:$0xff] %vm568_vm1, %v804_v53  ;;  %825 = vtanh.f32 %v437_v47 }
  0xf9   : > { %v808_v56 = vpop.eup %807  ;;  %569 = vst.msk [vmem:[%s974_s5] sm:$0xff] %vm568_vm1, %v806_v55  ;;  %827 = vtanh.f32 %v501_v50  ;;  %v743_v57 = vpop.f32.mrb[8].mxu0 }
  0xfa   : > { %v759_v58 = vpop.f32.mrb[8].mxu1  ;;  %v810_v59 = vpop.eup %809  ;;  %585 = vst.msk [vmem:[%s974_s5 + $0x80] sm:$0xff] %vm568_vm1, %v808_v56  ;;  %829 = vtanh.f32 %v429_v52  ;;  %v450_v60 = vadd.f32 %v743_v57, %v956_v20 }
  0xfb   : > { %v514_v61 = vadd.f32 %v759_v58, %v956_v20  ;;  %v441_v62 = vpop.f32.mrb[9].mxu0  ;;  %v505_v63 = vpop.f32.mrb[9].mxu1  ;;  %572 = vst.msk [vmem:[%s974_s5 + $0x18] sm:$0xff] %vm568_vm1, %v810_v59  ;;  %831 = vtanh.f32 %v493_v54 }
  0xfc   : > { %v812_v0 = vpop.eup %811  ;;  %v442_v1 = vadd.f32 %v956_v20, %v441_v62  ;;  %v506_v2 = vadd.f32 %v956_v20, %v505_v63  ;;  %v744_v3 = vpop.f32.mrb[10].mxu0  ;;  %833 = vtanh.f32 %v450_v60 }
  0xfd   : > { %v760_v4 = vpop.f32.mrb[10].mxu1  ;;  %v814_v5 = vpop.eup %813  ;;  %588 = vst.msk [vmem:[%s974_s5 + $0x98] sm:$0xff] %vm568_vm1, %v812_v0  ;;  %v453_v6 = vadd.f32 %v744_v3, %v956_v20  ;;  %835 = vtanh.f32 %v514_v61 }
  0xfe   : > { %v444_v7 = vpop.f32.mrb[11].mxu0  ;;  %v508_v8 = vpop.f32.mrb[11].mxu1  ;;  %570 = vst.msk [vmem:[%s974_s5 + $0x8] sm:$0xff] %vm568_vm1, %v814_v5  ;;  %v517_v10 = vadd.f32 %v760_v4, %v956_v20  ;;  %837 = vtanh.f32 %v442_v1 }
  0xff   : > { %v816_v9 = vpop.eup %815  ;;  %v445_v12 = vadd.f32 %v956_v20, %v444_v7  ;;  %839 = vtanh.f32 %v506_v2  ;;  %v509_v14 = vadd.f32 %v956_v20, %v508_v8 }
 0x100   : > { %v818_v11 = vpop.eup %817  ;;  %586 = vst.msk [vmem:[%s974_s5 + $0x88] sm:$0xff] %vm568_vm1, %v816_v9  ;;  %841 = vtanh.f32 %v453_v6 }
 0x101   : > { %v820_v13 = vpop.eup %819  ;;  %575 = vst.msk [vmem:[%s974_s5 + $0x30] sm:$0xff] %vm568_vm1, %v818_v11  ;;  %843 = vtanh.f32 %v517_v10  ;;  %v747_v17 = vpop.f32.mrb[12].mxu0 }
 0x102   : > { %v822_v15 = vpop.eup %821  ;;  %591 = vst.msk [vmem:[%s974_s5 + $0xb0] sm:$0xff] %vm568_vm1, %v820_v13  ;;  %v763_v18 = vpop.f32.mrb[12].mxu1  ;;  %845 = vtanh.f32 %v445_v12  ;;  %v466_v21 = vadd.f32 %v747_v17, %v956_v20 }
 0x103   : > { %v824_v16 = vpop.eup %823  ;;  %573 = vst.msk [vmem:[%s974_s5 + $0x20] sm:$0xff] %vm568_vm1, %v822_v15  ;;  %v530_v22 = vadd.f32 %v763_v18, %v956_v20  ;;  %v457_v23 = vpop.f32.mrb[13].mxu0  ;;  %847 = vtanh.f32 %v509_v14 }
 0x104   : > { %v826_v19 = vpop.eup %825  ;;  %589 = vst.msk [vmem:[%s974_s5 + $0xa0] sm:$0xff] %vm568_vm1, %v824_v16  ;;  %v521_v24 = vpop.f32.mrb[13].mxu1  ;;  %v458_v26 = vadd.f32 %v956_v20, %v457_v23  ;;  %849 = vtanh.f32 %v466_v21 }
 0x105   : > { %v828_v25 = vpop.eup %827  ;;  %576 = vst.msk [vmem:[%s974_s5 + $0x38] sm:$0xff] %vm568_vm1, %v826_v19  ;;  %v522_v27 = vadd.f32 %v956_v20, %v521_v24  ;;  %v748_v28 = vpop.f32.mrb[14].mxu0  ;;  %851 = vtanh.f32 %v530_v22 }
 0x106   : > { %v764_v29 = vpop.f32.mrb[14].mxu1  ;;  %v830_v30 = vpop.eup %829  ;;  %592 = vst.msk [vmem:[%s974_s5 + $0xb8] sm:$0xff] %vm568_vm1, %v828_v25  ;;  %v469_v31 = vadd.f32 %v748_v28, %v956_v20  ;;  %853 = vtanh.f32 %v458_v26 }
 0x107   : > { %v460_v32 = vpop.f32.mrb[15].mxu0  ;;  %v524_v33 = vpop.f32.mrb[15].mxu1  ;;  %574 = vst.msk [vmem:[%s974_s5 + $0x28] sm:$0xff] %vm568_vm1, %v830_v30  ;;  %v533_v35 = vadd.f32 %v764_v29, %v956_v20  ;;  %855 = vtanh.f32 %v522_v27 }
 0x108   : > { %v832_v34 = vpop.eup %831  ;;  %v461_v37 = vadd.f32 %v956_v20, %v460_v32  ;;  %v525_v39 = vadd.f32 %v956_v20, %v524_v33  ;;  %857 = vtanh.f32 %v469_v31 }
 0x109   : > { %v834_v36 = vpop.eup %833  ;;  %590 = vst.msk [vmem:[%s974_s5 + $0xa8] sm:$0xff] %vm568_vm1, %v832_v34  ;;  %859 = vtanh.f32 %v533_v35 }
 0x10a   : > { %v836_v38 = vpop.eup %835  ;;  %579 = vst.msk [vmem:[%s974_s5 + $0x50] sm:$0xff] %vm568_vm1, %v834_v36  ;;  %861 = vtanh.f32 %v461_v37 }
 0x10b   : > { %v838_v40 = vpop.eup %837  ;;  %595 = vst.msk [vmem:[%s974_s5 + $0xd0] sm:$0xff] %vm568_vm1, %v836_v38  ;;  %863 = vtanh.f32 %v525_v39 }
 0x10c   : > { %v840_v41 = vpop.eup %839  ;;  %577 = vst.msk [vmem:[%s974_s5 + $0x40] sm:$0xff] %vm568_vm1, %v838_v40 }
 0x10d   : > { %v842_v42 = vpop.eup %841  ;;  %593 = vst.msk [vmem:[%s974_s5 + $0xc0] sm:$0xff] %vm568_vm1, %v840_v41 }
 0x10e   : > { %v844_v43 = vpop.eup %843  ;;  %580 = vst.msk [vmem:[%s974_s5 + $0x58] sm:$0xff] %vm568_vm1, %v842_v42 }
 0x10f   : > { %v846_v20 = vpop.eup %845  ;;  %596 = vst.msk [vmem:[%s974_s5 + $0xd8] sm:$0xff] %vm568_vm1, %v844_v43 }
 0x110   : > { %v848_v44 = vpop.eup %847  ;;  %578 = vst.msk [vmem:[%s974_s5 + $0x48] sm:$0xff] %vm568_vm1, %v846_v20 }
 0x111   : > { %v850_v45 = vpop.eup %849  ;;  %594 = vst.msk [vmem:[%s974_s5 + $0xc8] sm:$0xff] %vm568_vm1, %v848_v44 }
 0x112   : > { %v852_v46 = vpop.eup %851  ;;  %583 = vst.msk [vmem:[%s974_s5 + $0x70] sm:$0xff] %vm568_vm1, %v850_v45 }
 0x113   : > { %v854_v47 = vpop.eup %853  ;;  %599 = vst.msk [vmem:[%s974_s5 + $0xf0] sm:$0xff] %vm568_vm1, %v852_v46 }
 0x114   : > { %v856_v48 = vpop.eup %855  ;;  %581 = vst.msk [vmem:[%s974_s5 + $0x60] sm:$0xff] %vm568_vm1, %v854_v47 }
 0x115   : > { %v858_v49 = vpop.eup %857  ;;  %597 = vst.msk [vmem:[%s974_s5 + $0xe0] sm:$0xff] %vm568_vm1, %v856_v48 }
 0x116   : > { %v860_v50 = vpop.eup %859  ;;  %584 = vst.msk [vmem:[%s974_s5 + $0x78] sm:$0xff] %vm568_vm1, %v858_v49 }
 0x117   : > { %v862_v51 = vpop.eup %861  ;;  %600 = vst.msk [vmem:[%s974_s5 + $0xf8] sm:$0xff] %vm568_vm1, %v860_v50 }
 0x118   : > { %v864_v52 = vpop.eup %863  ;;  %582 = vst.msk [vmem:[%s974_s5 + $0x68] sm:$0xff] %vm568_vm1, %v862_v51 }
 0x119   : > { %598 = vst.msk [vmem:[%s974_s5 + $0xe8] sm:$0xff] %vm568_vm1, %v864_v52 }
 0x11a PF: > { %s13_s12 = sadd.s32 1, %s871_s12  }
 0x11b   : > { %p10_p4 = scmp.ge.s32.totalorder %s13_s12, 4  }
 0x11d   :  { %12 = sbr.rel (!%p10_p4) target bundleno = 1 (0x1), region = 62 }

</bundles_post_ra>
